<compile_context>
chip_gen: v7x
topology: tpu7x:2x2x1
jax: 0.10.0
libtpu: 0.0.40
codegen_flags: <defaults>
</compile_context>

<pallas_src>
import math

import jax
import jax.numpy as jnp
from jax.experimental import pallas as pl
from jax.experimental.pallas import tpu as pltpu

# ----------------------------- small config ---------------------------------
NUM_LAYERS = 4      # config.num_hidden_layers (12 in real BERT)
HIDDEN     = 32     # config.hidden_size
NUM_HEADS  = 4      # config.num_attention_heads
HEAD_DIM   = HIDDEN // NUM_HEADS
INTER      = 64     # config.intermediate_size
SEQ        = 8
BATCH      = 2
LN_EPS     = 1e-12  # BertLayerNorm eps


# --------------------------- in-kernel helpers -------------------------------
def _gelu(x):
    # tanh-approximation GELU: the transcendental lands on the EUP slot.
    # TODO(synk): the PyTorch reference uses exact-erf GELU; the tanh form
    # differs by <~1e-3 per element (negligible for inference).
    c = math.sqrt(2.0 / math.pi)
    return 0.5 * x * (1.0 + jnp.tanh(c * (x + 0.044715 * (x * x * x))))


def _layernorm(x, gamma, beta):
    mu = jnp.mean(x, axis=-1, keepdims=True)
    var = jnp.mean((x - mu) ** 2, axis=-1, keepdims=True)
    return (x - mu) * jax.lax.rsqrt(var + LN_EPS) * gamma + beta


# ------------------------------- kernel builder -------------------------------
def make_bert_encoder_call(num_layers, B, S, H, I, num_heads):
    head_dim = H // num_heads
    BS = B * S
    scale = 1.0 / math.sqrt(head_dim)

    def kernel(x_ref, amask_ref,
               wqkv_ref, bqkv_ref, wo_ref, wi_ref, wo2_ref, bi_ref, vec_ref,
               out_ref, x_sc):
        layer = pl.program_id(0)

        # Layer 0: pull the embeddings into the resident activation scratch.
        # TODO(synk): at real sizes on v7x, make this input memory_space=pl.ANY
        # and DMA it only here, instead of pinning its VMEM block for all layers.
        @pl.when(layer == 0)
        def _():
            x_sc[...] = x_ref[...]

        x = x_sc[...]                                 # (B*S, H) f32 resident activation
        x_b16 = x.astype(jnp.bfloat16)                # bf16 matmul operand, f32 accum
        add_mask = amask_ref[...][:, None, :]         # (B, 1, S) additive key mask

        vec = vec_ref[0]                              # (6, H) packed bias/LN vectors
        bo, g1, be1 = vec[0:1, :], vec[1:2, :], vec[2:3, :]
        bo2, g2, be2 = vec[3:4, :], vec[4:5, :], vec[5:6, :]

        # ---------------- self attention ----------------
        # Per-head weights are leading-axis indexed (free); no lane slicing of
        # computed values and no context scratch / masked partial stores.
        attn = None
        for h in range(num_heads):                    # static unroll; batched over B
            qh = (jnp.dot(x_b16, wqkv_ref[0, 0 * num_heads + h],
                          preferred_element_type=jnp.float32)
                  + bqkv_ref[0, 0 * num_heads + h]).reshape(B, S, head_dim)
            kh = (jnp.dot(x_b16, wqkv_ref[0, 1 * num_heads + h],
                          preferred_element_type=jnp.float32)
                  + bqkv_ref[0, 1 * num_heads + h]).reshape(B, S, head_dim)
            vh = (jnp.dot(x_b16, wqkv_ref[0, 2 * num_heads + h],
                          preferred_element_type=jnp.float32)
                  + bqkv_ref[0, 2 * num_heads + h]).reshape(B, S, head_dim)

            s = (jnp.einsum('bqd,bkd->bqk', qh, kh,
                            preferred_element_type=jnp.float32) * scale + add_mask)
            s = s - jnp.max(s, axis=-1, keepdims=True)            # stable softmax
            e = jnp.exp(s)
            p = e * pl.reciprocal(jnp.sum(e, axis=-1, keepdims=True), approx=True)
            ctx_h = jnp.einsum('bqk,bkd->bqd', p, vh,
                               preferred_element_type=jnp.float32)
            ctx_h = ctx_h.reshape(BS, head_dim)
            # accumulate the output projection per head -> no head concatenate
            contrib = jnp.dot(ctx_h.astype(jnp.bfloat16), wo_ref[0, h],
                              preferred_element_type=jnp.float32)
            attn = contrib if attn is None else attn + contrib

        attn = attn + bo
        x1 = _layernorm(attn + x, g1, be1)            # dropout == identity (eval)

        # ---------------- feed-forward ----------------
        inter = _gelu(jnp.dot(x1.astype(jnp.bfloat16), wi_ref[0],
                              preferred_element_type=jnp.float32) + bi_ref[0])
        ff = jnp.dot(inter.astype(jnp.bfloat16), wo2_ref[0],
                     preferred_element_type=jnp.float32) + bo2
        x2 = _layernorm(ff + x1, g2, be2)

        x_sc[...] = x2                                # feed the next layer
        # NOTE: at H=32 this is a masked sub-128-lane store; at real H=768 the
        # output block is lane-dense automatically.
        out_ref[0] = x2.astype(out_ref.dtype)

    def lspec(shape):                                 # per-layer-indexed block
        nd = len(shape)
        return pl.BlockSpec((1,) + shape, lambda l, _n=nd: (l,) + (0,) * _n)

    def full(shape):                                  # layer-invariant block
        nd = len(shape)
        return pl.BlockSpec(shape, lambda l, _n=nd: (0,) * _n)

    # TODO(synk): for v7x dual-TensorCore use, add a leading "parallel" grid
    # axis over B*S row tiles (requires streaming full-sequence K/V per tile).
    return pl.pallas_call(
        kernel,
        out_shape=jax.ShapeDtypeStruct((num_layers, BS, H), jnp.float32),
        grid_spec=pltpu.PrefetchScalarGridSpec(
            num_scalar_prefetch=0,
            grid=(num_layers,),
            in_specs=[
                full((BS, H)),                               # embeddings (rows = batch*seq)
                full((B, S)),                                # additive attention mask
                lspec((3 * num_heads, H, head_dim)),         # per-head Wq|Wk|Wv (bf16)
                lspec((3 * num_heads, 1, head_dim)),         # per-head bq|bk|bv
                lspec((num_heads, head_dim, H)),             # per-head Wo row-blocks (bf16)
                lspec((H, I)),                               # Wi (bf16)
                lspec((I, H)),                               # Wo2 (bf16)
                lspec((1, I)),                               # bi
                lspec((6, H)),                               # [bo, ln1_g, ln1_b, bo2, ln2_g, ln2_b]
            ],
            out_specs=pl.BlockSpec((1, BS, H), lambda l: (l, 0, 0)),
            scratch_shapes=[pltpu.VMEM((BS, H), jnp.float32)],   # resident activation
        ),
        compiler_params=pltpu.CompilerParams(
            # layer axis carries a sequential dependency -> must be "arbitrary"
            dimension_semantics=("arbitrary",),
            vmem_limit_bytes=32 * 1024 * 1024,
        ),
    )


# ------------------------------ params & wrapper -------------------------------
def init_params(key, num_layers, H, I, num_heads):
    """Deterministic synthetic parameters, packed per-head and stacked over layers
    (weights ~ N(0, 0.02) stored in bf16, biases 0, LayerNorm gamma=1 / beta=0)."""
    L = num_layers
    hd = H // num_heads
    kq, kk, kv, ko, ki, ko2 = jax.random.split(key, 6)
    nrm = lambda k, s: (0.02 * jax.random.normal(k, s)).astype(jnp.float32)
    zeros = lambda s: jnp.zeros(s, jnp.float32)
    ones = lambda s: jnp.ones(s, jnp.float32)

    wq, wk, wv = nrm(kq, (L, H, H)), nrm(kk, (L, H, H)), nrm(kv, (L, H, H))
    # (L,H,H) -> per-head (L, nh, H, hd): head h uses output columns h*hd:(h+1)*hd
    tohead = lambda w: w.reshape(L, H, num_heads, hd).transpose(0, 2, 1, 3)
    wqkv = jnp.concatenate([tohead(wq), tohead(wk), tohead(wv)], axis=1)   # (L, 3*nh, H, hd)
    # Wo: head h uses input rows h*hd:(h+1)*hd -> (L, nh, hd, H)
    wo = nrm(ko, (L, H, H)).reshape(L, num_heads, hd, H)

    return dict(
        wqkv=wqkv.astype(jnp.bfloat16),
        bqkv=zeros((L, 3 * num_heads, 1, hd)),
        wo=wo.astype(jnp.bfloat16),
        wi=nrm(ki, (L, H, I)).astype(jnp.bfloat16),
        wo2=nrm(ko2, (L, I, H)).astype(jnp.bfloat16),
        bi=zeros((L, 1, I)),
        # rows: attn-output bias, LN1 gamma, LN1 beta, FFN-output bias, LN2 gamma, LN2 beta
        vec=jnp.stack([zeros((L, H)), ones((L, H)), zeros((L, H)),
                       zeros((L, H)), ones((L, H)), zeros((L, H))], axis=1),
    )


def bert_encoder_forward(encoder_call, params, embeddings, mask):
    """Matches BertEncoder.forward(..., attention_flg=False): returns the list of
    per-layer outputs (each layer feeds the next), all from ONE pallas_call."""
    # TODO(synk): attention_flg=True path (returning the last layer's attention
    # probabilities) is not implemented.
    B, S, H = embeddings.shape
    # extended additive mask, same as (1 - m) * -10000 in the BertModel reference
    add_mask = (1.0 - mask.astype(jnp.float32)) * -10000.0        # (B, S)
    out = encoder_call(embeddings.reshape(B * S, H), add_mask,
                       params["wqkv"], params["bqkv"], params["wo"],
                       params["wi"], params["wo2"], params["bi"], params["vec"])
    out = out.reshape(-1, B, S, H)
    return [out[i] for i in range(out.shape[0])]


if __name__ == "__main__":
    key = jax.random.PRNGKey(0)
    k_emb, k_par = jax.random.split(key)

    embeddings = jax.random.normal(k_emb, (BATCH, SEQ, HIDDEN), dtype=jnp.float32)
    # 1 = real token, 0 = padding (second sequence half-padded)
    mask = jnp.ones((BATCH, SEQ), jnp.float32).at[1, SEQ // 2:].set(0.0)

    params = init_params(k_par, NUM_LAYERS, HIDDEN, INTER, NUM_HEADS)
    encoder_call = make_bert_encoder_call(NUM_LAYERS, BATCH, SEQ, HIDDEN, INTER, NUM_HEADS)

    all_encoder_output = bert_encoder_forward(encoder_call, params, embeddings, mask)
    jax.block_until_ready(all_encoder_output)
    assert len(all_encoder_output) == NUM_LAYERS
    assert all(o.shape == (BATCH, SEQ, HIDDEN) for o in all_encoder_output)
    assert all(bool(jnp.all(jnp.isfinite(o))) for o in all_encoder_output)
    print("KERNEL_OK")
</pallas_src>

<mosaic_0001>
module attributes {stable_mosaic.version = 11 : i64} {
  func.func @kernel(%arg0: i32, %arg1: memref<16x32xf32, #tpu.memory_space<vmem>>, %arg2: memref<2x8xf32, #tpu.memory_space<vmem>>, %arg3: memref<1x12x32x8xbf16, #tpu.memory_space<vmem>>, %arg4: memref<1x12x1x8xf32, #tpu.memory_space<vmem>>, %arg5: memref<1x4x8x32xbf16, #tpu.memory_space<vmem>>, %arg6: memref<1x32x64xbf16, #tpu.memory_space<vmem>>, %arg7: memref<1x64x32xbf16, #tpu.memory_space<vmem>>, %arg8: memref<1x1x64xf32, #tpu.memory_space<vmem>>, %arg9: memref<1x6x32xf32, #tpu.memory_space<vmem>>, %arg10: memref<1x16x32xf32, #tpu.memory_space<vmem>>, %arg11: memref<16x32xf32, #tpu.memory_space<vmem>>) attributes {dimension_semantics = [#tpu.dimension_semantics<arbitrary>], iteration_bounds = array<i64: 4>, scalar_prefetch = 0 : i64, scratch_operands = 1 : i64, tpu.core_type = #tpu.core_type<tc>, window_params = [{pipeline_mode = #tpu.pipeline_mode<synchronous>, transform_indices = @transform_0, window_bounds = array<i64: 16, 32>}, {pipeline_mode = #tpu.pipeline_mode<synchronous>, transform_indices = @transform_1, window_bounds = array<i64: 2, 8>}, {transform_indices = @transform_2, window_bounds = array<i64: 1, 12, 32, 8>}, {transform_indices = @transform_3, window_bounds = array<i64: 1, 12, 1, 8>}, {transform_indices = @transform_4, window_bounds = array<i64: 1, 4, 8, 32>}, {transform_indices = @transform_5, window_bounds = array<i64: 1, 32, 64>}, {transform_indices = @transform_6, window_bounds = array<i64: 1, 64, 32>}, {transform_indices = @transform_7, window_bounds = array<i64: 1, 1, 64>}, {transform_indices = @transform_8, window_bounds = array<i64: 1, 6, 32>}, {transform_indices = @transform_9, window_bounds = array<i64: 1, 16, 32>}]} {
    %c0_i32 = arith.constant 0 : i32
    %0 = arith.cmpi eq, %arg0, %c0_i32 : i32
    %1 = arith.extui %0 : i1 to i32
    %c0_i32_0 = arith.constant 0 : i32
    %2 = arith.cmpi ne, %1, %c0_i32_0 : i32
    scf.if %2 {
      %c0_173 = arith.constant 0 : index
      %c0_174 = arith.constant 0 : index
      %277 = vector.load %arg1[%c0_173, %c0_174] : memref<16x32xf32, #tpu.memory_space<vmem>>, vector<16x32xf32>
      %c0_175 = arith.constant 0 : index
      %c0_176 = arith.constant 0 : index
      %278 = vector.load %arg11[%c0_175, %c0_176] : memref<16x32xf32, #tpu.memory_space<vmem>>, vector<16x32xf32>
      tpu.vector_store %arg11[%c0_175, %c0_176], %277 {strides = array<i32>} : memref<16x32xf32, #tpu.memory_space<vmem>>, vector<16x32xf32>,
    } else {
    }
    %c0 = arith.constant 0 : index
    %c0_1 = arith.constant 0 : index
    %3 = vector.load %arg11[%c0, %c0_1] : memref<16x32xf32, #tpu.memory_space<vmem>>, vector<16x32xf32>
    %4 = arith.truncf %3 : vector<16x32xf32> to vector<16x32xbf16>
    %c0_2 = arith.constant 0 : index
    %c0_3 = arith.constant 0 : index
    %5 = vector.load %arg2[%c0_2, %c0_3] : memref<2x8xf32, #tpu.memory_space<vmem>>, vector<2x8xf32>
    %6 = vector.shape_cast %5 : vector<2x8xf32> to vector<2x1x8xf32>
    %c0_4 = arith.constant 0 : index
    %c0_5 = arith.constant 0 : index
    %c0_6 = arith.constant 0 : index
    %7 = vector.load %arg9[%c0_4, %c0_5, %c0_6] : memref<1x6x32xf32, #tpu.memory_space<vmem>>, vector<1x6x32xf32>
    %8 = vector.shape_cast %7 : vector<1x6x32xf32> to vector<6x32xf32>
    %9 = vector.extract_strided_slice %8 {offsets = [0, 0], sizes = [1, 32], strides = [1, 1]} : vector<6x32xf32> to vector<1x32xf32>
    %10 = vector.extract_strided_slice %8 {offsets = [1, 0], sizes = [1, 32], strides = [1, 1]} : vector<6x32xf32> to vector<1x32xf32>
    %11 = vector.extract_strided_slice %8 {offsets = [2, 0], sizes = [1, 32], strides = [1, 1]} : vector<6x32xf32> to vector<1x32xf32>
    %12 = vector.extract_strided_slice %8 {offsets = [3, 0], sizes = [1, 32], strides = [1, 1]} : vector<6x32xf32> to vector<1x32xf32>
    %13 = vector.extract_strided_slice %8 {offsets = [4, 0], sizes = [1, 32], strides = [1, 1]} : vector<6x32xf32> to vector<1x32xf32>
    %14 = vector.extract_strided_slice %8 {offsets = [5, 0], sizes = [1, 32], strides = [1, 1]} : vector<6x32xf32> to vector<1x32xf32>
    %c0_7 = arith.constant 0 : index
    %c0_8 = arith.constant 0 : index
    %c0_9 = arith.constant 0 : index
    %c0_10 = arith.constant 0 : index
    %15 = vector.load %arg3[%c0_7, %c0_8, %c0_9, %c0_10] : memref<1x12x32x8xbf16, #tpu.memory_space<vmem>>, vector<1x1x32x8xbf16>
    %16 = vector.shape_cast %15 : vector<1x1x32x8xbf16> to vector<32x8xbf16>
    %cst = arith.constant dense<0.000000e+00> : vector<16x8xf32>
    %17 = tpu.matmul %4, %16, %cst {dimension_numbers = #tpu.dot_dimension_numbers<[1], [0], [0], [1], [0, 0, 1, 1], [], []>} : vector<16x32xbf16>, vector<32x8xbf16>, vector<16x8xf32> -> vector<16x8xf32>
    %c0_11 = arith.constant 0 : index
    %c0_12 = arith.constant 0 : index
    %c0_13 = arith.constant 0 : index
    %c0_14 = arith.constant 0 : index
    %18 = vector.load %arg4[%c0_11, %c0_12, %c0_13, %c0_14] : memref<1x12x1x8xf32, #tpu.memory_space<vmem>>, vector<1x1x1x8xf32>
    %19 = vector.shape_cast %18 : vector<1x1x1x8xf32> to vector<1x8xf32>
    %20 = vector.broadcast %19 : vector<1x8xf32> to vector<16x8xf32>
    %21 = arith.addf %17, %20 : vector<16x8xf32>
    %22 = vector.shape_cast %21 : vector<16x8xf32> to vector<2x8x8xf32>
    %c0_15 = arith.constant 0 : index
    %c4 = arith.constant 4 : index
    %c0_16 = arith.constant 0 : index
    %c0_17 = arith.constant 0 : index
    %23 = vector.load %arg3[%c0_15, %c4, %c0_16, %c0_17] : memref<1x12x32x8xbf16, #tpu.memory_space<vmem>>, vector<1x1x32x8xbf16>
    %24 = vector.shape_cast %23 : vector<1x1x32x8xbf16> to vector<32x8xbf16>
    %cst_18 = arith.constant dense<0.000000e+00> : vector<16x8xf32>
    %25 = tpu.matmul %4, %24, %cst_18 {dimension_numbers = #tpu.dot_dimension_numbers<[1], [0], [0], [1], [0, 0, 1, 1], [], []>} : vector<16x32xbf16>, vector<32x8xbf16>, vector<16x8xf32> -> vector<16x8xf32>
    %c0_19 = arith.constant 0 : index
    %c4_20 = arith.constant 4 : index
    %c0_21 = arith.constant 0 : index
    %c0_22 = arith.constant 0 : index
    %26 = vector.load %arg4[%c0_19, %c4_20, %c0_21, %c0_22] : memref<1x12x1x8xf32, #tpu.memory_space<vmem>>, vector<1x1x1x8xf32>
    %27 = vector.shape_cast %26 : vector<1x1x1x8xf32> to vector<1x8xf32>
    %28 = vector.broadcast %27 : vector<1x8xf32> to vector<16x8xf32>
    %29 = arith.addf %25, %28 : vector<16x8xf32>
    %30 = vector.shape_cast %29 : vector<16x8xf32> to vector<2x8x8xf32>
    %c0_23 = arith.constant 0 : index
    %c8 = arith.constant 8 : index
    %c0_24 = arith.constant 0 : index
    %c0_25 = arith.constant 0 : index
    %31 = vector.load %arg3[%c0_23, %c8, %c0_24, %c0_25] : memref<1x12x32x8xbf16, #tpu.memory_space<vmem>>, vector<1x1x32x8xbf16>
    %32 = vector.shape_cast %31 : vector<1x1x32x8xbf16> to vector<32x8xbf16>
    %cst_26 = arith.constant dense<0.000000e+00> : vector<16x8xf32>
    %33 = tpu.matmul %4, %32, %cst_26 {dimension_numbers = #tpu.dot_dimension_numbers<[1], [0], [0], [1], [0, 0, 1, 1], [], []>} : vector<16x32xbf16>, vector<32x8xbf16>, vector<16x8xf32> -> vector<16x8xf32>
    %c0_27 = arith.constant 0 : index
    %c8_28 = arith.constant 8 : index
    %c0_29 = arith.constant 0 : index
    %c0_30 = arith.constant 0 : index
    %34 = vector.load %arg4[%c0_27, %c8_28, %c0_29, %c0_30] : memref<1x12x1x8xf32, #tpu.memory_space<vmem>>, vector<1x1x1x8xf32>
    %35 = vector.shape_cast %34 : vector<1x1x1x8xf32> to vector<1x8xf32>
    %36 = vector.broadcast %35 : vector<1x8xf32> to vector<16x8xf32>
    %37 = arith.addf %33, %36 : vector<16x8xf32>
    %38 = vector.shape_cast %37 : vector<16x8xf32> to vector<2x8x8xf32>
    "tpu.trace_start"() <{level = 10 : i32, message = "bqd,bkd->bqk"}> : () -> ()
    %cst_31 = arith.constant dense<0.000000e+00> : vector<2x8x8xf32>
    %39 = tpu.matmul %22, %30, %cst_31 {dimension_numbers = #tpu.dot_dimension_numbers<[2], [2], [1], [1], [0, 0, 0, 1, 1, 1], [0], [0]>} : vector<2x8x8xf32>, vector<2x8x8xf32>, vector<2x8x8xf32> -> vector<2x8x8xf32>
    "tpu.trace_stop"() : () -> ()
    %cst_32 = arith.constant 0.353553385 : f32
    %40 = vector.broadcast %cst_32 : f32 to vector<2x8x8xf32>
    %41 = arith.mulf %39, %40 : vector<2x8x8xf32>
    %42 = vector.broadcast %6 : vector<2x1x8xf32> to vector<2x8x8xf32>
    %43 = arith.addf %41, %42 : vector<2x8x8xf32>
    %cst_33 = arith.constant dense<0xFF800000> : vector<2x8xf32>
    %44 = vector.multi_reduction <maximumf>, %43, %cst_33 [2] : vector<2x8x8xf32> to vector<2x8xf32>
    %45 = vector.shape_cast %44 : vector<2x8xf32> to vector<2x8x1xf32>
    %46 = vector.broadcast %45 : vector<2x8x1xf32> to vector<2x8x8xf32>
    %47 = arith.subf %43, %46 : vector<2x8x8xf32>
    %48 = math.exp %47 : vector<2x8x8xf32>
    %cst_34 = arith.constant dense<0.000000e+00> : vector<2x8xf32>
    %49 = vector.multi_reduction <add>, %48, %cst_34 [2] : vector<2x8x8xf32> to vector<2x8xf32>
    %50 = vector.shape_cast %49 : vector<2x8xf32> to vector<2x8x1xf32>
    %51 = tpu.reciprocal %50 {approx = true} : vector<2x8x1xf32> -> vector<2x8x1xf32>
    %52 = vector.broadcast %51 : vector<2x8x1xf32> to vector<2x8x8xf32>
    %53 = arith.mulf %48, %52 : vector<2x8x8xf32>
    "tpu.trace_start"() <{level = 10 : i32, message = "bqk,bkd->bqd"}> : () -> ()
    %cst_35 = arith.constant dense<0.000000e+00> : vector<2x8x8xf32>
    %54 = tpu.matmul %53, %38, %cst_35 {dimension_numbers = #tpu.dot_dimension_numbers<[2], [1], [1], [2], [0, 0, 0, 1, 1, 2], [0], [0]>} : vector<2x8x8xf32>, vector<2x8x8xf32>, vector<2x8x8xf32> -> vector<2x8x8xf32>
    "tpu.trace_stop"() : () -> ()
    %55 = vector.shape_cast %54 : vector<2x8x8xf32> to vector<16x8xf32>
    %56 = arith.truncf %55 : vector<16x8xf32> to vector<16x8xbf16>
    %c0_36 = arith.constant 0 : index
    %c0_37 = arith.constant 0 : index
    %c0_38 = arith.constant 0 : index
    %c0_39 = arith.constant 0 : index
    %57 = vector.load %arg5[%c0_36, %c0_37, %c0_38, %c0_39] : memref<1x4x8x32xbf16, #tpu.memory_space<vmem>>, vector<1x1x8x32xbf16>
    %58 = vector.shape_cast %57 : vector<1x1x8x32xbf16> to vector<8x32xbf16>
    %cst_40 = arith.constant dense<0.000000e+00> : vector<16x32xf32>
    %59 = tpu.matmul %56, %58, %cst_40 {dimension_numbers = #tpu.dot_dimension_numbers<[1], [0], [0], [1], [0, 0, 1, 1], [], []>} : vector<16x8xbf16>, vector<8x32xbf16>, vector<16x32xf32> -> vector<16x32xf32>
    %c0_41 = arith.constant 0 : index
    %c1 = arith.constant 1 : index
    %c0_42 = arith.constant 0 : index
    %c0_43 = arith.constant 0 : index
    %60 = vector.load %arg3[%c0_41, %c1, %c0_42, %c0_43] : memref<1x12x32x8xbf16, #tpu.memory_space<vmem>>, vector<1x1x32x8xbf16>
    %61 = vector.shape_cast %60 : vector<1x1x32x8xbf16> to vector<32x8xbf16>
    %cst_44 = arith.constant dense<0.000000e+00> : vector<16x8xf32>
    %62 = tpu.matmul %4, %61, %cst_44 {dimension_numbers = #tpu.dot_dimension_numbers<[1], [0], [0], [1], [0, 0, 1, 1], [], []>} : vector<16x32xbf16>, vector<32x8xbf16>, vector<16x8xf32> -> vector<16x8xf32>
    %c0_45 = arith.constant 0 : index
    %c1_46 = arith.constant 1 : index
    %c0_47 = arith.constant 0 : index
    %c0_48 = arith.constant 0 : index
    %63 = vector.load %arg4[%c0_45, %c1_46, %c0_47, %c0_48] : memref<1x12x1x8xf32, #tpu.memory_space<vmem>>, vector<1x1x1x8xf32>
    %64 = vector.shape_cast %63 : vector<1x1x1x8xf32> to vector<1x8xf32>
    %65 = vector.broadcast %64 : vector<1x8xf32> to vector<16x8xf32>
    %66 = arith.addf %62, %65 : vector<16x8xf32>
    %67 = vector.shape_cast %66 : vector<16x8xf32> to vector<2x8x8xf32>
    %c0_49 = arith.constant 0 : index
    %c5 = arith.constant 5 : index
    %c0_50 = arith.constant 0 : index
    %c0_51 = arith.constant 0 : index
    %68 = vector.load %arg3[%c0_49, %c5, %c0_50, %c0_51] : memref<1x12x32x8xbf16, #tpu.memory_space<vmem>>, vector<1x1x32x8xbf16>
    %69 = vector.shape_cast %68 : vector<1x1x32x8xbf16> to vector<32x8xbf16>
    %cst_52 = arith.constant dense<0.000000e+00> : vector<16x8xf32>
    %70 = tpu.matmul %4, %69, %cst_52 {dimension_numbers = #tpu.dot_dimension_numbers<[1], [0], [0], [1], [0, 0, 1, 1], [], []>} : vector<16x32xbf16>, vector<32x8xbf16>, vector<16x8xf32> -> vector<16x8xf32>
    %c0_53 = arith.constant 0 : index
    %c5_54 = arith.constant 5 : index
    %c0_55 = arith.constant 0 : index
    %c0_56 = arith.constant 0 : index
    %71 = vector.load %arg4[%c0_53, %c5_54, %c0_55, %c0_56] : memref<1x12x1x8xf32, #tpu.memory_space<vmem>>, vector<1x1x1x8xf32>
    %72 = vector.shape_cast %71 : vector<1x1x1x8xf32> to vector<1x8xf32>
    %73 = vector.broadcast %72 : vector<1x8xf32> to vector<16x8xf32>
    %74 = arith.addf %70, %73 : vector<16x8xf32>
    %75 = vector.shape_cast %74 : vector<16x8xf32> to vector<2x8x8xf32>
    %c0_57 = arith.constant 0 : index
    %c9 = arith.constant 9 : index
    %c0_58 = arith.constant 0 : index
    %c0_59 = arith.constant 0 : index
    %76 = vector.load %arg3[%c0_57, %c9, %c0_58, %c0_59] : memref<1x12x32x8xbf16, #tpu.memory_space<vmem>>, vector<1x1x32x8xbf16>
    %77 = vector.shape_cast %76 : vector<1x1x32x8xbf16> to vector<32x8xbf16>
    %cst_60 = arith.constant dense<0.000000e+00> : vector<16x8xf32>
    %78 = tpu.matmul %4, %77, %cst_60 {dimension_numbers = #tpu.dot_dimension_numbers<[1], [0], [0], [1], [0, 0, 1, 1], [], []>} : vector<16x32xbf16>, vector<32x8xbf16>, vector<16x8xf32> -> vector<16x8xf32>
    %c0_61 = arith.constant 0 : index
    %c9_62 = arith.constant 9 : index
    %c0_63 = arith.constant 0 : index
    %c0_64 = arith.constant 0 : index
    %79 = vector.load %arg4[%c0_61, %c9_62, %c0_63, %c0_64] : memref<1x12x1x8xf32, #tpu.memory_space<vmem>>, vector<1x1x1x8xf32>
    %80 = vector.shape_cast %79 : vector<1x1x1x8xf32> to vector<1x8xf32>
    %81 = vector.broadcast %80 : vector<1x8xf32> to vector<16x8xf32>
    %82 = arith.addf %78, %81 : vector<16x8xf32>
    %83 = vector.shape_cast %82 : vector<16x8xf32> to vector<2x8x8xf32>
    "tpu.trace_start"() <{level = 10 : i32, message = "bqd,bkd->bqk"}> : () -> ()
    %cst_65 = arith.constant dense<0.000000e+00> : vector<2x8x8xf32>
    %84 = tpu.matmul %67, %75, %cst_65 {dimension_numbers = #tpu.dot_dimension_numbers<[2], [2], [1], [1], [0, 0, 0, 1, 1, 1], [0], [0]>} : vector<2x8x8xf32>, vector<2x8x8xf32>, vector<2x8x8xf32> -> vector<2x8x8xf32>
    "tpu.trace_stop"() : () -> ()
    %cst_66 = arith.constant 0.353553385 : f32
    %85 = vector.broadcast %cst_66 : f32 to vector<2x8x8xf32>
    %86 = arith.mulf %84, %85 : vector<2x8x8xf32>
    %87 = vector.broadcast %6 : vector<2x1x8xf32> to vector<2x8x8xf32>
    %88 = arith.addf %86, %87 : vector<2x8x8xf32>
    %cst_67 = arith.constant dense<0xFF800000> : vector<2x8xf32>
    %89 = vector.multi_reduction <maximumf>, %88, %cst_67 [2] : vector<2x8x8xf32> to vector<2x8xf32>
    %90 = vector.shape_cast %89 : vector<2x8xf32> to vector<2x8x1xf32>
    %91 = vector.broadcast %90 : vector<2x8x1xf32> to vector<2x8x8xf32>
    %92 = arith.subf %88, %91 : vector<2x8x8xf32>
    %93 = math.exp %92 : vector<2x8x8xf32>
    %cst_68 = arith.constant dense<0.000000e+00> : vector<2x8xf32>
    %94 = vector.multi_reduction <add>, %93, %cst_68 [2] : vector<2x8x8xf32> to vector<2x8xf32>
    %95 = vector.shape_cast %94 : vector<2x8xf32> to vector<2x8x1xf32>
    %96 = tpu.reciprocal %95 {approx = true} : vector<2x8x1xf32> -> vector<2x8x1xf32>
    %97 = vector.broadcast %96 : vector<2x8x1xf32> to vector<2x8x8xf32>
    %98 = arith.mulf %93, %97 : vector<2x8x8xf32>
    "tpu.trace_start"() <{level = 10 : i32, message = "bqk,bkd->bqd"}> : () -> ()
    %cst_69 = arith.constant dense<0.000000e+00> : vector<2x8x8xf32>
    %99 = tpu.matmul %98, %83, %cst_69 {dimension_numbers = #tpu.dot_dimension_numbers<[2], [1], [1], [2], [0, 0, 0, 1, 1, 2], [0], [0]>} : vector<2x8x8xf32>, vector<2x8x8xf32>, vector<2x8x8xf32> -> vector<2x8x8xf32>
    "tpu.trace_stop"() : () -> ()
    %100 = vector.shape_cast %99 : vector<2x8x8xf32> to vector<16x8xf32>
    %101 = arith.truncf %100 : vector<16x8xf32> to vector<16x8xbf16>
    %c0_70 = arith.constant 0 : index
    %c1_71 = arith.constant 1 : index
    %c0_72 = arith.constant 0 : index
    %c0_73 = arith.constant 0 : index
    %102 = vector.load %arg5[%c0_70, %c1_71, %c0_72, %c0_73] : memref<1x4x8x32xbf16, #tpu.memory_space<vmem>>, vector<1x1x8x32xbf16>
    %103 = vector.shape_cast %102 : vector<1x1x8x32xbf16> to vector<8x32xbf16>
    %cst_74 = arith.constant dense<0.000000e+00> : vector<16x32xf32>
    %104 = tpu.matmul %101, %103, %cst_74 {dimension_numbers = #tpu.dot_dimension_numbers<[1], [0], [0], [1], [0, 0, 1, 1], [], []>} : vector<16x8xbf16>, vector<8x32xbf16>, vector<16x32xf32> -> vector<16x32xf32>
    %105 = arith.addf %59, %104 : vector<16x32xf32>
    %c0_75 = arith.constant 0 : index
    %c2 = arith.constant 2 : index
    %c0_76 = arith.constant 0 : index
    %c0_77 = arith.constant 0 : index
    %106 = vector.load %arg3[%c0_75, %c2, %c0_76, %c0_77] : memref<1x12x32x8xbf16, #tpu.memory_space<vmem>>, vector<1x1x32x8xbf16>
    %107 = vector.shape_cast %106 : vector<1x1x32x8xbf16> to vector<32x8xbf16>
    %cst_78 = arith.constant dense<0.000000e+00> : vector<16x8xf32>
    %108 = tpu.matmul %4, %107, %cst_78 {dimension_numbers = #tpu.dot_dimension_numbers<[1], [0], [0], [1], [0, 0, 1, 1], [], []>} : vector<16x32xbf16>, vector<32x8xbf16>, vector<16x8xf32> -> vector<16x8xf32>
    %c0_79 = arith.constant 0 : index
    %c2_80 = arith.constant 2 : index
    %c0_81 = arith.constant 0 : index
    %c0_82 = arith.constant 0 : index
    %109 = vector.load %arg4[%c0_79, %c2_80, %c0_81, %c0_82] : memref<1x12x1x8xf32, #tpu.memory_space<vmem>>, vector<1x1x1x8xf32>
    %110 = vector.shape_cast %109 : vector<1x1x1x8xf32> to vector<1x8xf32>
    %111 = vector.broadcast %110 : vector<1x8xf32> to vector<16x8xf32>
    %112 = arith.addf %108, %111 : vector<16x8xf32>
    %113 = vector.shape_cast %112 : vector<16x8xf32> to vector<2x8x8xf32>
    %c0_83 = arith.constant 0 : index
    %c6 = arith.constant 6 : index
    %c0_84 = arith.constant 0 : index
    %c0_85 = arith.constant 0 : index
    %114 = vector.load %arg3[%c0_83, %c6, %c0_84, %c0_85] : memref<1x12x32x8xbf16, #tpu.memory_space<vmem>>, vector<1x1x32x8xbf16>
    %115 = vector.shape_cast %114 : vector<1x1x32x8xbf16> to vector<32x8xbf16>
    %cst_86 = arith.constant dense<0.000000e+00> : vector<16x8xf32>
    %116 = tpu.matmul %4, %115, %cst_86 {dimension_numbers = #tpu.dot_dimension_numbers<[1], [0], [0], [1], [0, 0, 1, 1], [], []>} : vector<16x32xbf16>, vector<32x8xbf16>, vector<16x8xf32> -> vector<16x8xf32>
    %c0_87 = arith.constant 0 : index
    %c6_88 = arith.constant 6 : index
    %c0_89 = arith.constant 0 : index
    %c0_90 = arith.constant 0 : index
    %117 = vector.load %arg4[%c0_87, %c6_88, %c0_89, %c0_90] : memref<1x12x1x8xf32, #tpu.memory_space<vmem>>, vector<1x1x1x8xf32>
    %118 = vector.shape_cast %117 : vector<1x1x1x8xf32> to vector<1x8xf32>
    %119 = vector.broadcast %118 : vector<1x8xf32> to vector<16x8xf32>
    %120 = arith.addf %116, %119 : vector<16x8xf32>
    %121 = vector.shape_cast %120 : vector<16x8xf32> to vector<2x8x8xf32>
    %c0_91 = arith.constant 0 : index
    %c10 = arith.constant 10 : index
    %c0_92 = arith.constant 0 : index
    %c0_93 = arith.constant 0 : index
    %122 = vector.load %arg3[%c0_91, %c10, %c0_92, %c0_93] : memref<1x12x32x8xbf16, #tpu.memory_space<vmem>>, vector<1x1x32x8xbf16>
    %123 = vector.shape_cast %122 : vector<1x1x32x8xbf16> to vector<32x8xbf16>
    %cst_94 = arith.constant dense<0.000000e+00> : vector<16x8xf32>
    %124 = tpu.matmul %4, %123, %cst_94 {dimension_numbers = #tpu.dot_dimension_numbers<[1], [0], [0], [1], [0, 0, 1, 1], [], []>} : vector<16x32xbf16>, vector<32x8xbf16>, vector<16x8xf32> -> vector<16x8xf32>
    %c0_95 = arith.constant 0 : index
    %c10_96 = arith.constant 10 : index
    %c0_97 = arith.constant 0 : index
    %c0_98 = arith.constant 0 : index
    %125 = vector.load %arg4[%c0_95, %c10_96, %c0_97, %c0_98] : memref<1x12x1x8xf32, #tpu.memory_space<vmem>>, vector<1x1x1x8xf32>
    %126 = vector.shape_cast %125 : vector<1x1x1x8xf32> to vector<1x8xf32>
    %127 = vector.broadcast %126 : vector<1x8xf32> to vector<16x8xf32>
    %128 = arith.addf %124, %127 : vector<16x8xf32>
    %129 = vector.shape_cast %128 : vector<16x8xf32> to vector<2x8x8xf32>
    "tpu.trace_start"() <{level = 10 : i32, message = "bqd,bkd->bqk"}> : () -> ()
    %cst_99 = arith.constant dense<0.000000e+00> : vector<2x8x8xf32>
    %130 = tpu.matmul %113, %121, %cst_99 {dimension_numbers = #tpu.dot_dimension_numbers<[2], [2], [1], [1], [0, 0, 0, 1, 1, 1], [0], [0]>} : vector<2x8x8xf32>, vector<2x8x8xf32>, vector<2x8x8xf32> -> vector<2x8x8xf32>
    "tpu.trace_stop"() : () -> ()
    %cst_100 = arith.constant 0.353553385 : f32
    %131 = vector.broadcast %cst_100 : f32 to vector<2x8x8xf32>
    %132 = arith.mulf %130, %131 : vector<2x8x8xf32>
    %133 = vector.broadcast %6 : vector<2x1x8xf32> to vector<2x8x8xf32>
    %134 = arith.addf %132, %133 : vector<2x8x8xf32>
    %cst_101 = arith.constant dense<0xFF800000> : vector<2x8xf32>
    %135 = vector.multi_reduction <maximumf>, %134, %cst_101 [2] : vector<2x8x8xf32> to vector<2x8xf32>
    %136 = vector.shape_cast %135 : vector<2x8xf32> to vector<2x8x1xf32>
    %137 = vector.broadcast %136 : vector<2x8x1xf32> to vector<2x8x8xf32>
    %138 = arith.subf %134, %137 : vector<2x8x8xf32>
    %139 = math.exp %138 : vector<2x8x8xf32>
    %cst_102 = arith.constant dense<0.000000e+00> : vector<2x8xf32>
    %140 = vector.multi_reduction <add>, %139, %cst_102 [2] : vector<2x8x8xf32> to vector<2x8xf32>
    %141 = vector.shape_cast %140 : vector<2x8xf32> to vector<2x8x1xf32>
    %142 = tpu.reciprocal %141 {approx = true} : vector<2x8x1xf32> -> vector<2x8x1xf32>
    %143 = vector.broadcast %142 : vector<2x8x1xf32> to vector<2x8x8xf32>
    %144 = arith.mulf %139, %143 : vector<2x8x8xf32>
    "tpu.trace_start"() <{level = 10 : i32, message = "bqk,bkd->bqd"}> : () -> ()
    %cst_103 = arith.constant dense<0.000000e+00> : vector<2x8x8xf32>
    %145 = tpu.matmul %144, %129, %cst_103 {dimension_numbers = #tpu.dot_dimension_numbers<[2], [1], [1], [2], [0, 0, 0, 1, 1, 2], [0], [0]>} : vector<2x8x8xf32>, vector<2x8x8xf32>, vector<2x8x8xf32> -> vector<2x8x8xf32>
    "tpu.trace_stop"() : () -> ()
    %146 = vector.shape_cast %145 : vector<2x8x8xf32> to vector<16x8xf32>
    %147 = arith.truncf %146 : vector<16x8xf32> to vector<16x8xbf16>
    %c0_104 = arith.constant 0 : index
    %c2_105 = arith.constant 2 : index
    %c0_106 = arith.constant 0 : index
    %c0_107 = arith.constant 0 : index
    %148 = vector.load %arg5[%c0_104, %c2_105, %c0_106, %c0_107] : memref<1x4x8x32xbf16, #tpu.memory_space<vmem>>, vector<1x1x8x32xbf16>
    %149 = vector.shape_cast %148 : vector<1x1x8x32xbf16> to vector<8x32xbf16>
    %cst_108 = arith.constant dense<0.000000e+00> : vector<16x32xf32>
    %150 = tpu.matmul %147, %149, %cst_108 {dimension_numbers = #tpu.dot_dimension_numbers<[1], [0], [0], [1], [0, 0, 1, 1], [], []>} : vector<16x8xbf16>, vector<8x32xbf16>, vector<16x32xf32> -> vector<16x32xf32>
    %151 = arith.addf %105, %150 : vector<16x32xf32>
    %c0_109 = arith.constant 0 : index
    %c3 = arith.constant 3 : index
    %c0_110 = arith.constant 0 : index
    %c0_111 = arith.constant 0 : index
    %152 = vector.load %arg3[%c0_109, %c3, %c0_110, %c0_111] : memref<1x12x32x8xbf16, #tpu.memory_space<vmem>>, vector<1x1x32x8xbf16>
    %153 = vector.shape_cast %152 : vector<1x1x32x8xbf16> to vector<32x8xbf16>
    %cst_112 = arith.constant dense<0.000000e+00> : vector<16x8xf32>
    %154 = tpu.matmul %4, %153, %cst_112 {dimension_numbers = #tpu.dot_dimension_numbers<[1], [0], [0], [1], [0, 0, 1, 1], [], []>} : vector<16x32xbf16>, vector<32x8xbf16>, vector<16x8xf32> -> vector<16x8xf32>
    %c0_113 = arith.constant 0 : index
    %c3_114 = arith.constant 3 : index
    %c0_115 = arith.constant 0 : index
    %c0_116 = arith.constant 0 : index
    %155 = vector.load %arg4[%c0_113, %c3_114, %c0_115, %c0_116] : memref<1x12x1x8xf32, #tpu.memory_space<vmem>>, vector<1x1x1x8xf32>
    %156 = vector.shape_cast %155 : vector<1x1x1x8xf32> to vector<1x8xf32>
    %157 = vector.broadcast %156 : vector<1x8xf32> to vector<16x8xf32>
    %158 = arith.addf %154, %157 : vector<16x8xf32>
    %159 = vector.shape_cast %158 : vector<16x8xf32> to vector<2x8x8xf32>
    %c0_117 = arith.constant 0 : index
    %c7 = arith.constant 7 : index
    %c0_118 = arith.constant 0 : index
    %c0_119 = arith.constant 0 : index
    %160 = vector.load %arg3[%c0_117, %c7, %c0_118, %c0_119] : memref<1x12x32x8xbf16, #tpu.memory_space<vmem>>, vector<1x1x32x8xbf16>
    %161 = vector.shape_cast %160 : vector<1x1x32x8xbf16> to vector<32x8xbf16>
    %cst_120 = arith.constant dense<0.000000e+00> : vector<16x8xf32>
    %162 = tpu.matmul %4, %161, %cst_120 {dimension_numbers = #tpu.dot_dimension_numbers<[1], [0], [0], [1], [0, 0, 1, 1], [], []>} : vector<16x32xbf16>, vector<32x8xbf16>, vector<16x8xf32> -> vector<16x8xf32>
    %c0_121 = arith.constant 0 : index
    %c7_122 = arith.constant 7 : index
    %c0_123 = arith.constant 0 : index
    %c0_124 = arith.constant 0 : index
    %163 = vector.load %arg4[%c0_121, %c7_122, %c0_123, %c0_124] : memref<1x12x1x8xf32, #tpu.memory_space<vmem>>, vector<1x1x1x8xf32>
    %164 = vector.shape_cast %163 : vector<1x1x1x8xf32> to vector<1x8xf32>
    %165 = vector.broadcast %164 : vector<1x8xf32> to vector<16x8xf32>
    %166 = arith.addf %162, %165 : vector<16x8xf32>
    %167 = vector.shape_cast %166 : vector<16x8xf32> to vector<2x8x8xf32>
    %c0_125 = arith.constant 0 : index
    %c11 = arith.constant 11 : index
    %c0_126 = arith.constant 0 : index
    %c0_127 = arith.constant 0 : index
    %168 = vector.load %arg3[%c0_125, %c11, %c0_126, %c0_127] : memref<1x12x32x8xbf16, #tpu.memory_space<vmem>>, vector<1x1x32x8xbf16>
    %169 = vector.shape_cast %168 : vector<1x1x32x8xbf16> to vector<32x8xbf16>
    %cst_128 = arith.constant dense<0.000000e+00> : vector<16x8xf32>
    %170 = tpu.matmul %4, %169, %cst_128 {dimension_numbers = #tpu.dot_dimension_numbers<[1], [0], [0], [1], [0, 0, 1, 1], [], []>} : vector<16x32xbf16>, vector<32x8xbf16>, vector<16x8xf32> -> vector<16x8xf32>
    %c0_129 = arith.constant 0 : index
    %c11_130 = arith.constant 11 : index
    %c0_131 = arith.constant 0 : index
    %c0_132 = arith.constant 0 : index
    %171 = vector.load %arg4[%c0_129, %c11_130, %c0_131, %c0_132] : memref<1x12x1x8xf32, #tpu.memory_space<vmem>>, vector<1x1x1x8xf32>
    %172 = vector.shape_cast %171 : vector<1x1x1x8xf32> to vector<1x8xf32>
    %173 = vector.broadcast %172 : vector<1x8xf32> to vector<16x8xf32>
    %174 = arith.addf %170, %173 : vector<16x8xf32>
    %175 = vector.shape_cast %174 : vector<16x8xf32> to vector<2x8x8xf32>
    "tpu.trace_start"() <{level = 10 : i32, message = "bqd,bkd->bqk"}> : () -> ()
    %cst_133 = arith.constant dense<0.000000e+00> : vector<2x8x8xf32>
    %176 = tpu.matmul %159, %167, %cst_133 {dimension_numbers = #tpu.dot_dimension_numbers<[2], [2], [1], [1], [0, 0, 0, 1, 1, 1], [0], [0]>} : vector<2x8x8xf32>, vector<2x8x8xf32>, vector<2x8x8xf32> -> vector<2x8x8xf32>
    "tpu.trace_stop"() : () -> ()
    %cst_134 = arith.constant 0.353553385 : f32
    %177 = vector.broadcast %cst_134 : f32 to vector<2x8x8xf32>
    %178 = arith.mulf %176, %177 : vector<2x8x8xf32>
    %179 = vector.broadcast %6 : vector<2x1x8xf32> to vector<2x8x8xf32>
    %180 = arith.addf %178, %179 : vector<2x8x8xf32>
    %cst_135 = arith.constant dense<0xFF800000> : vector<2x8xf32>
    %181 = vector.multi_reduction <maximumf>, %180, %cst_135 [2] : vector<2x8x8xf32> to vector<2x8xf32>
    %182 = vector.shape_cast %181 : vector<2x8xf32> to vector<2x8x1xf32>
    %183 = vector.broadcast %182 : vector<2x8x1xf32> to vector<2x8x8xf32>
    %184 = arith.subf %180, %183 : vector<2x8x8xf32>
    %185 = math.exp %184 : vector<2x8x8xf32>
    %cst_136 = arith.constant dense<0.000000e+00> : vector<2x8xf32>
    %186 = vector.multi_reduction <add>, %185, %cst_136 [2] : vector<2x8x8xf32> to vector<2x8xf32>
    %187 = vector.shape_cast %186 : vector<2x8xf32> to vector<2x8x1xf32>
    %188 = tpu.reciprocal %187 {approx = true} : vector<2x8x1xf32> -> vector<2x8x1xf32>
    %189 = vector.broadcast %188 : vector<2x8x1xf32> to vector<2x8x8xf32>
    %190 = arith.mulf %185, %189 : vector<2x8x8xf32>
    "tpu.trace_start"() <{level = 10 : i32, message = "bqk,bkd->bqd"}> : () -> ()
    %cst_137 = arith.constant dense<0.000000e+00> : vector<2x8x8xf32>
    %191 = tpu.matmul %190, %175, %cst_137 {dimension_numbers = #tpu.dot_dimension_numbers<[2], [1], [1], [2], [0, 0, 0, 1, 1, 2], [0], [0]>} : vector<2x8x8xf32>, vector<2x8x8xf32>, vector<2x8x8xf32> -> vector<2x8x8xf32>
    "tpu.trace_stop"() : () -> ()
    %192 = vector.shape_cast %191 : vector<2x8x8xf32> to vector<16x8xf32>
    %193 = arith.truncf %192 : vector<16x8xf32> to vector<16x8xbf16>
    %c0_138 = arith.constant 0 : index
    %c3_139 = arith.constant 3 : index
    %c0_140 = arith.constant 0 : index
    %c0_141 = arith.constant 0 : index
    %194 = vector.load %arg5[%c0_138, %c3_139, %c0_140, %c0_141] : memref<1x4x8x32xbf16, #tpu.memory_space<vmem>>, vector<1x1x8x32xbf16>
    %195 = vector.shape_cast %194 : vector<1x1x8x32xbf16> to vector<8x32xbf16>
    %cst_142 = arith.constant dense<0.000000e+00> : vector<16x32xf32>
    %196 = tpu.matmul %193, %195, %cst_142 {dimension_numbers = #tpu.dot_dimension_numbers<[1], [0], [0], [1], [0, 0, 1, 1], [], []>} : vector<16x8xbf16>, vector<8x32xbf16>, vector<16x32xf32> -> vector<16x32xf32>
    %197 = arith.addf %151, %196 : vector<16x32xf32>
    %198 = vector.broadcast %9 : vector<1x32xf32> to vector<16x32xf32>
    %199 = arith.addf %197, %198 : vector<16x32xf32>
    %200 = arith.addf %199, %3 : vector<16x32xf32>
    %cst_143 = arith.constant dense<0.000000e+00> : vector<16xf32>
    %201 = vector.multi_reduction <add>, %200, %cst_143 [1] : vector<16x32xf32> to vector<16xf32>
    %202 = vector.shape_cast %201 : vector<16xf32> to vector<16x1xf32>
    %cst_144 = arith.constant 3.200000e+01 : f32
    %203 = vector.broadcast %cst_144 : f32 to vector<16x1xf32>
    %204 = arith.divf %202, %203 : vector<16x1xf32>
    %205 = vector.broadcast %204 : vector<16x1xf32> to vector<16x32xf32>
    %206 = arith.subf %200, %205 : vector<16x32xf32>
    %207 = arith.mulf %206, %206 : vector<16x32xf32>
    %cst_145 = arith.constant dense<0.000000e+00> : vector<16xf32>
    %208 = vector.multi_reduction <add>, %207, %cst_145 [1] : vector<16x32xf32> to vector<16xf32>
    %209 = vector.shape_cast %208 : vector<16xf32> to vector<16x1xf32>
    %cst_146 = arith.constant 3.200000e+01 : f32
    %210 = vector.broadcast %cst_146 : f32 to vector<16x1xf32>
    %211 = arith.divf %209, %210 : vector<16x1xf32>
    %212 = vector.broadcast %204 : vector<16x1xf32> to vector<16x32xf32>
    %213 = arith.subf %200, %212 : vector<16x32xf32>
    %cst_147 = arith.constant 9.99999996E-13 : f32
    %214 = vector.broadcast %cst_147 : f32 to vector<16x1xf32>
    %215 = arith.addf %211, %214 : vector<16x1xf32>
    %216 = math.rsqrt %215 : vector<16x1xf32>
    %217 = vector.broadcast %216 : vector<16x1xf32> to vector<16x32xf32>
    %218 = arith.mulf %213, %217 : vector<16x32xf32>
    %219 = vector.broadcast %10 : vector<1x32xf32> to vector<16x32xf32>
    %220 = arith.mulf %218, %219 : vector<16x32xf32>
    %221 = vector.broadcast %11 : vector<1x32xf32> to vector<16x32xf32>
    %222 = arith.addf %220, %221 : vector<16x32xf32>
    %223 = arith.truncf %222 : vector<16x32xf32> to vector<16x32xbf16>
    %c0_148 = arith.constant 0 : index
    %c0_149 = arith.constant 0 : index
    %c0_150 = arith.constant 0 : index
    %224 = vector.load %arg6[%c0_148, %c0_149, %c0_150] : memref<1x32x64xbf16, #tpu.memory_space<vmem>>, vector<1x32x64xbf16>
    %225 = vector.shape_cast %224 : vector<1x32x64xbf16> to vector<32x64xbf16>
    %cst_151 = arith.constant dense<0.000000e+00> : vector<16x64xf32>
    %226 = tpu.matmul %223, %225, %cst_151 {dimension_numbers = #tpu.dot_dimension_numbers<[1], [0], [0], [1], [0, 0, 1, 1], [], []>} : vector<16x32xbf16>, vector<32x64xbf16>, vector<16x64xf32> -> vector<16x64xf32>
    %c0_152 = arith.constant 0 : index
    %c0_153 = arith.constant 0 : index
    %c0_154 = arith.constant 0 : index
    %227 = vector.load %arg8[%c0_152, %c0_153, %c0_154] : memref<1x1x64xf32, #tpu.memory_space<vmem>>, vector<1x1x64xf32>
    %228 = vector.shape_cast %227 : vector<1x1x64xf32> to vector<1x64xf32>
    %229 = vector.broadcast %228 : vector<1x64xf32> to vector<16x64xf32>
    %230 = arith.addf %226, %229 : vector<16x64xf32>
    %cst_155 = arith.constant 5.000000e-01 : f32
    %231 = vector.broadcast %cst_155 : f32 to vector<16x64xf32>
    %232 = arith.mulf %231, %230 : vector<16x64xf32>
    %233 = arith.mulf %230, %230 : vector<16x64xf32>
    %234 = arith.mulf %233, %230 : vector<16x64xf32>
    %cst_156 = arith.constant 4.471500e-02 : f32
    %235 = vector.broadcast %cst_156 : f32 to vector<16x64xf32>
    %236 = arith.mulf %235, %234 : vector<16x64xf32>
    %237 = arith.addf %230, %236 : vector<16x64xf32>
    %cst_157 = arith.constant 0.797884583 : f32
    %238 = vector.broadcast %cst_157 : f32 to vector<16x64xf32>
    %239 = arith.mulf %238, %237 : vector<16x64xf32>
    %240 = math.tanh %239 : vector<16x64xf32>
    %cst_158 = arith.constant 1.000000e+00 : f32
    %241 = vector.broadcast %cst_158 : f32 to vector<16x64xf32>
    %242 = arith.addf %241, %240 : vector<16x64xf32>
    %243 = arith.mulf %232, %242 : vector<16x64xf32>
    %244 = arith.truncf %243 : vector<16x64xf32> to vector<16x64xbf16>
    %c0_159 = arith.constant 0 : index
    %c0_160 = arith.constant 0 : index
    %c0_161 = arith.constant 0 : index
    %245 = vector.load %arg7[%c0_159, %c0_160, %c0_161] : memref<1x64x32xbf16, #tpu.memory_space<vmem>>, vector<1x64x32xbf16>
    %246 = vector.shape_cast %245 : vector<1x64x32xbf16> to vector<64x32xbf16>
    %cst_162 = arith.constant dense<0.000000e+00> : vector<16x32xf32>
    %247 = tpu.matmul %244, %246, %cst_162 {dimension_numbers = #tpu.dot_dimension_numbers<[1], [0], [0], [1], [0, 0, 1, 1], [], []>} : vector<16x64xbf16>, vector<64x32xbf16>, vector<16x32xf32> -> vector<16x32xf32>
    %248 = vector.broadcast %12 : vector<1x32xf32> to vector<16x32xf32>
    %249 = arith.addf %247, %248 : vector<16x32xf32>
    %250 = arith.addf %249, %222 : vector<16x32xf32>
    %cst_163 = arith.constant dense<0.000000e+00> : vector<16xf32>
    %251 = vector.multi_reduction <add>, %250, %cst_163 [1] : vector<16x32xf32> to vector<16xf32>
    %252 = vector.shape_cast %251 : vector<16xf32> to vector<16x1xf32>
    %cst_164 = arith.constant 3.200000e+01 : f32
    %253 = vector.broadcast %cst_164 : f32 to vector<16x1xf32>
    %254 = arith.divf %252, %253 : vector<16x1xf32>
    %255 = vector.broadcast %254 : vector<16x1xf32> to vector<16x32xf32>
    %256 = arith.subf %250, %255 : vector<16x32xf32>
    %257 = arith.mulf %256, %256 : vector<16x32xf32>
    %cst_165 = arith.constant dense<0.000000e+00> : vector<16xf32>
    %258 = vector.multi_reduction <add>, %257, %cst_165 [1] : vector<16x32xf32> to vector<16xf32>
    %259 = vector.shape_cast %258 : vector<16xf32> to vector<16x1xf32>
    %cst_166 = arith.constant 3.200000e+01 : f32
    %260 = vector.broadcast %cst_166 : f32 to vector<16x1xf32>
    %261 = arith.divf %259, %260 : vector<16x1xf32>
    %262 = vector.broadcast %254 : vector<16x1xf32> to vector<16x32xf32>
    %263 = arith.subf %250, %262 : vector<16x32xf32>
    %cst_167 = arith.constant 9.99999996E-13 : f32
    %264 = vector.broadcast %cst_167 : f32 to vector<16x1xf32>
    %265 = arith.addf %261, %264 : vector<16x1xf32>
    %266 = math.rsqrt %265 : vector<16x1xf32>
    %267 = vector.broadcast %266 : vector<16x1xf32> to vector<16x32xf32>
    %268 = arith.mulf %263, %267 : vector<16x32xf32>
    %269 = vector.broadcast %13 : vector<1x32xf32> to vector<16x32xf32>
    %270 = arith.mulf %268, %269 : vector<16x32xf32>
    %271 = vector.broadcast %14 : vector<1x32xf32> to vector<16x32xf32>
    %272 = arith.addf %270, %271 : vector<16x32xf32>
    %c0_168 = arith.constant 0 : index
    %c0_169 = arith.constant 0 : index
    %273 = vector.load %arg11[%c0_168, %c0_169] : memref<16x32xf32, #tpu.memory_space<vmem>>, vector<16x32xf32>
    tpu.vector_store %arg11[%c0_168, %c0_169], %272 {strides = array<i32>} : memref<16x32xf32, #tpu.memory_space<vmem>>, vector<16x32xf32>,
    %c0_170 = arith.constant 0 : index
    %c0_171 = arith.constant 0 : index
    %c0_172 = arith.constant 0 : index
    %274 = vector.load %arg10[%c0_170, %c0_171, %c0_172] : memref<1x16x32xf32, #tpu.memory_space<vmem>>, vector<1x16x32xf32>
    %275 = vector.shape_cast %274 : vector<1x16x32xf32> to vector<16x32xf32>
    %276 = vector.shape_cast %272 : vector<16x32xf32> to vector<1x16x32xf32>
    tpu.vector_store %arg10[%c0_170, %c0_171, %c0_172], %276 {strides = array<i32>} : memref<1x16x32xf32, #tpu.memory_space<vmem>>, vector<1x16x32xf32>,
    return
  }
  func.func @transform_0(%arg0: i32) -> (i32, i32) {
    %c0_i32 = arith.constant 0 : i32
    %c0_i32_0 = arith.constant 0 : i32
    %c0_i32_1 = arith.constant 0 : i32
    return %c0_i32, %c0_i32_0 : i32, i32
  }
  func.func @transform_1(%arg0: i32) -> (i32, i32) {
    %c0_i32 = arith.constant 0 : i32
    %c0_i32_0 = arith.constant 0 : i32
    %c0_i32_1 = arith.constant 0 : i32
    return %c0_i32, %c0_i32_0 : i32, i32
  }
  func.func @transform_2(%arg0: i32) -> (i32, i32, i32, i32) {
    %c0_i32 = arith.constant 0 : i32
    %c0_i32_0 = arith.constant 0 : i32
    %c0_i32_1 = arith.constant 0 : i32
    %c0_i32_2 = arith.constant 0 : i32
    return %arg0, %c0_i32, %c0_i32_0, %c0_i32_1 : i32, i32, i32, i32
  }
  func.func @transform_3(%arg0: i32) -> (i32, i32, i32, i32) {
    %c0_i32 = arith.constant 0 : i32
    %c0_i32_0 = arith.constant 0 : i32
    %c0_i32_1 = arith.constant 0 : i32
    %c0_i32_2 = arith.constant 0 : i32
    return %arg0, %c0_i32, %c0_i32_0, %c0_i32_1 : i32, i32, i32, i32
  }
  func.func @transform_4(%arg0: i32) -> (i32, i32, i32, i32) {
    %c0_i32 = arith.constant 0 : i32
    %c0_i32_0 = arith.constant 0 : i32
    %c0_i32_1 = arith.constant 0 : i32
    %c0_i32_2 = arith.constant 0 : i32
    return %arg0, %c0_i32, %c0_i32_0, %c0_i32_1 : i32, i32, i32, i32
  }
  func.func @transform_5(%arg0: i32) -> (i32, i32, i32) {
    %c0_i32 = arith.constant 0 : i32
    %c0_i32_0 = arith.constant 0 : i32
    %c0_i32_1 = arith.constant 0 : i32
    return %arg0, %c0_i32, %c0_i32_0 : i32, i32, i32
  }
  func.func @transform_6(%arg0: i32) -> (i32, i32, i32) {
    %c0_i32 = arith.constant 0 : i32
    %c0_i32_0 = arith.constant 0 : i32
    %c0_i32_1 = arith.constant 0 : i32
    return %arg0, %c0_i32, %c0_i32_0 : i32, i32, i32
  }
  func.func @transform_7(%arg0: i32) -> (i32, i32, i32) {
    %c0_i32 = arith.constant 0 : i32
    %c0_i32_0 = arith.constant 0 : i32
    %c0_i32_1 = arith.constant 0 : i32
    return %arg0, %c0_i32, %c0_i32_0 : i32, i32, i32
  }
  func.func @transform_8(%arg0: i32) -> (i32, i32, i32) {
    %c0_i32 = arith.constant 0 : i32
    %c0_i32_0 = arith.constant 0 : i32
    %c0_i32_1 = arith.constant 0 : i32
    return %arg0, %c0_i32, %c0_i32_0 : i32, i32, i32
  }
  func.func @transform_9(%arg0: i32) -> (i32, i32, i32) {
    %c0_i32 = arith.constant 0 : i32
    %c0_i32_0 = arith.constant 0 : i32
    %c0_i32_1 = arith.constant 0 : i32
    return %arg0, %c0_i32, %c0_i32_0 : i32, i32, i32
  }
}

</mosaic_0001>

<bundles_post_ra>
// kernel: tpu_custom_call.1
= control target key start
LH: loop header
LB: loop body
LE: loop exit
PB: predicated region body
PF: predicated region fallthrough
CT: control target
= control target key end

     0   :  { %s4371_s0 = inlined_call_operand.vmem [shape: f32[16,32], index: 0, kind: input, shape index: {}]   ;;  %s4372_s1 = inlined_call_operand.vmem [shape: f32[2,8], index: 1, kind: input, shape index: {}]   ;;  %s4373_s2 = inlined_call_operand.vmem [shape: bf16[4,12,32,8], index: 2, kind: input, shape index: {}]   ;;  %s4374_s3 = inlined_call_operand.vmem [shape: f32[4,12,1,8], index: 3, kind: input, shape index: {}]   ;;  %s4375_s4 = inlined_call_operand.vmem [shape: bf16[4,4,8,32], index: 4, kind: input, shape index: {}]   ;;  %s4376_s5 = inlined_call_operand.vmem [shape: bf16[4,32,64], index: 5, kind: input, shape index: {}]   ;;  %s4377_s6 = inlined_call_operand.vmem [shape: bf16[4,64,32], index: 6, kind: input, shape index: {}]   ;;  %s4378_s7 = inlined_call_operand.vmem [shape: f32[4,1,64], index: 7, kind: input, shape index: {}]   ;;  %s4379_s8 = inlined_call_operand.vmem [shape: f32[4,6,32], index: 8, kind: input, shape index: {}]   ;;  %s4380_s9 = inlined_call_operand.hbm [shape: f32[4,16,32], index: 9, kind: output, shape index: {}]  }
   0x1   :  { %4389 = sst [smem:[#allocation12_spill]] %s4373_s2 }
   0x2   :  { %4390 = sst [smem:[#allocation13_spill]] %s4375_s4 }
   0x3   :  { %4391 = sst [smem:[#allocation14_spill]] %s4380_s9 }
   0x4   :  { %14 = vsyncpa [#allocation4], 0 }
   0x5   :  { %16 = vsyncpa [#allocation4 + $0x1], 0  ;;  %s3899_s30 = smov 0   ;;  %s3901_s10 = smov 0  }
   0x6   :  { %s3903_s11 = smov 0   ;;  %s3905_s12 = smov 0  }
   0x7 LB: > { %4392 = sst [smem:[#allocation6_spill]] %s3829_s30  ;;  %s3920_s13 = sadd.s32 4294967295, %s3841_s12   ;;  %s3841_s12 = sphi %s3905_s12, %s4407_s12   ;;  %s3837_s11 = sphi %s3903_s11, %s4409_s11   ;;  %s3833_s10 = sphi %s3901_s10, %s4411_s10   ;;  %s3829_s30 = sphi %s3899_s30, %s4410_s30  }
   0x8   : > { %4393 = sst [smem:[#allocation7_spill]] %s3837_s11  ;;  %s3186_s14 = sadd.s32 4294967294, %s3841_s12  }
   0x9   : > { %4394 = sst [smem:[#allocation8_spill]] %s3841_s12  ;;  %s3924_s15 = sadd.s32 1, %s3841_s12  }
   0xa   : > { %4395 = sst [smem:[#allocation9_spill]] %s3924_s15  ;;  %s253_s16 = sadd.s32 1, %s3837_s11 }
   0xb   : > { %s250_s17 = ssub.s32 %s3841_s12, %s3924_s15  ;;  %p263_p0 = scmp.ne.s32.totalorder %s3837_s11, %s3833_s10 }
   0xc   : > { %p251_p1 = scmp.eq.s32.totalorder %s250_s17, 0  ;;  %p264_p2 = scmp.eq.s32.totalorder %s3920_s13, 3 }
   0xd   : > { %p269_p3 = scmp.ne.s32.totalorder %s3833_s10, %s3829_s30  ;;  %p270_p4 = scmp.eq.s32.totalorder %s3186_s14, 3 }
   0xe   : > { %s3935_s18 = scalar_select %p251_p1, %s3837_s11, %s253_s16  }
   0xf   : > { %p3937_p5 = por %p264_p2, %p263_p0  ;;  %p3941_p6 = por %p270_p4, %p269_p3 }
  0x10   : > { %4396 = sst [smem:[#allocation10_spill]] %s3935_s18  ;;  %p3189_p7 = scmp.ge.s32.totalorder %s3841_s12, 1 }
  0x11   : > { %s4398_s20 = scalar_select %p3941_p6, 1, 0 }
  0x12   : > { %p346_p8 = scmp.lt.s32.totalorder %s3841_s12, 5 }
  0x13   : > { %4399 = sst [smem:[#allocation11_spill]] %s4398_s20 }
  0x14   : > { %p347_p9 = pnand %p3189_p7, %p346_p8 }
  0x15   : > { %s4381_s21 = sand.u32 (!%p347_p9), 1, %s3833_s10   ;;  %p408_p10 = scmp.lt.s32.totalorder (!%p347_p9), %s3920_s13, 3 }
  0x16   : > { %350 = sbr.rel (%p347_p9) target bundleno = 5044 (0x13b4), region = 56  ;;  %s3190_s22 = sshll.u32 (!%p347_p9), %s4381_s21, 4 }
  0x17   : > { %s4400_s4 = sld [smem:[#allocation13_spill]] (!%p347_p9)  ;;  %s4401_s2 = sld [smem:[#allocation12_spill]] (!%p347_p9) }
  0x18   : > { %p3199_p11 = scmp.ne.s32.totalorder (!%p347_p9), %s3920_s13, 0 }
  0x1d   : > { %s3952_s23 = scalar_select %p408_p10, %s3920_s13, 3 }
  0x1e   : > { %v444_v0 = vld [vmem:[%s4371_s0] sm:$0xff] (!%p3199_p11)  ;;  %vm446_vm0 = vcmask (!%p3199_p11), 261120   ;;  %v445_v1 = vld [vmem:[%s4371_s0 + $0x8] sm:$0xff] (!%p3199_p11) }
  0x1f   : > { %s3657_s24 = smul.u32 192, %s3952_s23  ;;  %s3349_s25 = sshll.u32 %s3952_s23, 4  ;;  %447 = vst.msk [vmem:[#allocation2] sm:$0xff] (!%p3199_p11), %vm446_vm0, %v444_v0  ;;  %448 = vst.msk [vmem:[#allocation2 + $0x8] sm:$0xff] (!%p3199_p11), %vm446_vm0, %v445_v1 }
  0x20   : > { %s3658_s26 = smul.u32 12, %s3952_s23  ;;  %s3960_s29 = scalar_lea.vmem %s4400_s4, %s3349_s25 }
  0x21   : > { %s3965_s17 = scalar_lea.vmem %s4401_s2, %s3657_s24  ;;  %s3970_s11 = scalar_lea.vmem %s4376_s5, %s3349_s25 }
  0x22   : > { %s3975_s30 = scalar_lea.vmem %s4374_s3, %s3658_s26  ;;  %s3351_s12 = sshll.u32 %s3952_s23, 5 }
  0x23   : > { %s3981_s28 = scalar_lea.vmem %s4377_s6, %s3351_s12  ;;  %s434_s24 = scalar_lea.vmem %s4378_s7, %s3952_s23 }
  0x24   : > { %s3198_s16 = sshll.u32 %s3952_s23, 3  ;;  %s3993_s25 = scalar_lea.vmem [#allocation3], %s3190_s22 }
  0x25   : > { %s3991_s21 = scalar_lea.vmem %s4379_s8, %s3198_s16  ;;  %443 = sbr.rel (%p3199_p11) target bundleno = 44 (0x2c), region = 60 }
  0x2c PF: > { %v3703_v2 = vld [vmem:[%s3965_s17] sm:$0xff]   ;;  %v3843_v3 = vmov 0.0   ;;  %v3705_v5 = vld [vmem:[%s3965_s17 + $0x8] sm:$0xff]   ;;  %vm3844_vm1 = vmmov 0   ;;  %vm500_vm2 = vcmask 261120   ;;  %vm677_vm3 = vcmask 64512  }
  0x2d   : > { %3437 = vmatprep.subr.bf16.mxu0 %v3843_v3  ;;  %3445 = vmatprep.subr.bf16.mxu1 %v3843_v3  ;;  %v3704_v4 = vld [vmem:[%s3965_s17 + $0x40] sm:$0xff]   ;;  %v3706_v6 = vld [vmem:[%s3965_s17 + $0x48] sm:$0xff]   ;;  %v3845_v33 = vmov 1966171168   ;;  %v465_v35 = vlaneseq  ;;  %vm1542_vm4 = vcmask 1043456   ;;  %vm2952_vm5 = vcmask 523264  }
  0x2e   : > { %3438 = vmatpush3.bf16.msra.mxu0 %v3703_v2  ;;  %3441 = vmatprep.mubr.msk.bf16.mxu0 %vm3844_vm1, %v3843_v3  ;;  %v449_v7 = vld [vmem:[#allocation2] sm:$0xff]  ;;  %v450_v8 = vld [vmem:[#allocation2 + $0x8] sm:$0xff]  ;;  %v463_v34 = vunpack.c.l.s4 %v3845_v33  ;;  %v3713_v33 = vld [vmem:[%s3965_s17 + $0x90] sm:$0xff]   ;;  %s3352_s22 = sshll.u32 %s3920_s13, 8  ;;  %s3055_s23 = sshll.u32 %s3993_s25, 4  ;;  %s4320_s23 = int_to_ptr.vmem [resolvable:$true] %s3055_s23 }
  0x2f   : > { %3446 = vmatpush3.bf16.msra.mxu1 %v3704_v4  ;;  %3439 = vmatprep.subr.bf16.mxu0 %v3843_v3  ;;  %v4014_v9 = vpack.c.bf16 %v450_v8, %v449_v7  ;;  %v3707_v10 = vld [vmem:[%s3965_s17 + $0x80] sm:$0xff]   ;;  %v3708_v11 = vld [vmem:[%s3965_s17 + $0x88] sm:$0xff]   ;;  %v4052_v38 = vshrl.u32 %v465_v35, 7  ;;  %s4403_s13 = sand.u32 1, %s3833_s10   ;;  %s3779_s14 = scalar_lea.vmem %s4320_s23, 256 }
  0x30   : > { %3447 = vmatprep.subr.bf16.mxu1 %v3843_v3  ;;  %3449 = vmatprep.mubr.msk.bf16.mxu1 %vm3844_vm1, %v3843_v3  ;;  %v3210_v12 = vld [vmem:[%s3975_s30 + $0x4] ss:$0 sm:$0xff]  ;;  %v3201_v13 = vld [vmem:[%s3975_s30] ss:$0 sm:$0xff]  ;;  %v3219_v25 = vld [vmem:[%s3975_s30 + $0x8] ss:$0 sm:$0xff]  ;;  %v464_v37 = vunpack.c.0.s8 %v463_v34  ;;  %p3780_p12 = scmp.ne.s32.totalorder %s4320_s23, %s3779_s14 }
  0x31   : > { %v3200_v36 = vld.sshfl [vmem:[%s4372_s1] sm:$0x11 pattern:$0x75316420]  ;;  %v4056_v42 = vsub.s32 0, %v4052_v38  ;;  %v3714_v34 = vld [vmem:[%s3965_s17 + $0x98] sm:$0xff]  }
  0x32   : > { %3440 = vmatpush3.bf16.msra.mxu0 %v3705_v5  ;;  %v461_v39 = vcombine.high %v3200_v36, %v3200_v36  ;;  %v467_v40 = vsub.s32 %v464_v37, %v4052_v38  ;;  %p3781_p13 = pnand %p3780_p12, %p3937_p5 }
  0x33   : > { %3448 = vmatpush3.bf16.msra.mxu1 %v3706_v6  ;;  %3453 = vmatprep.subr.bf16.mxu0 %v3843_v3  ;;  %v3709_v6 = vld [vmem:[%s3965_s17 + $0x50] sm:$0xff]  }
  0x34   : > { %3466 = vmatprep.subr.mxu1 %v3843_v3  ;;  %v475_v41 = vrot.slane %v461_v39, %v467_v40  ;;  %v468_v43 = vrot.slane %v3200_v36, %v467_v40  ;;  %p3782_p0 = pneg %p3781_p13 }
  0x35   : > { %3442 = vmatmul.mubr.msk.bf16.vlgmr.msra.gmra.mrb[0].mxu0 %vm500_vm2, %v4014_v9 }
  0x36   : > { %3450 = vmatmul.mubr.msk.bf16.vlgmr.msra.gmra.mrb[0].mxu1 %vm500_vm2, %v4014_v9  ;;  %3454 = vmatpush3.bf16.msra.mxu0 %v3707_v10  ;;  %v4059_v46 = vrot.slane %v475_v41, %v4056_v42  ;;  %v4062_v51 = vrot.slane %v468_v43, %v4056_v42  ;;  %v3710_v10 = vld [vmem:[%s3965_s17 + $0x10] sm:$0xff]  }
  0x37   : > { %3455 = vmatprep.subr.bf16.mxu0 %v3843_v3  ;;  %3457 = vmatprep.mubr.msk.bf16.mxu0 %vm3844_vm1, %v3843_v3 }
  0x38   : > { %3468 = vmatprep.mubr.msk.f32.mxu1 %vm3844_vm1, %v3843_v3 }
  0x3a   : > { %3456 = vmatpush3.bf16.msra.mxu0 %v3708_v11  ;;  %v3711_v11 = vld [vmem:[%s3965_s17 + $0x58] sm:$0xff]  }
  0x3b   : > { %3461 = vmatprep.subr.mxu0 %v3843_v3 }
  0x3d   : > { %3458 = vmatmul.mubr.msk.bf16.vlgmr.msra.gmra.mrb[4].mxu0 %vm500_vm2, %v4014_v9 }
  0x3e   : > { %3463 = vmatprep.mubr.msk.f32.mxu0 %vm3844_vm1, %v3843_v3 }
 0x108   : > { %v538_v14 = vpop.f32.mrb[0].mxu0 }
 0x109   : > { %v604_v15 = vpop.f32.mrb[0].mxu1  ;;  %v3443_v16 = vpop.f32.mrb[1].mxu0  ;;  %v539_v20 = vadd.f32 %v3201_v13, %v538_v14 }
 0x10a   : > { %v605_v17 = vadd.f32 %v3210_v12, %v604_v15  ;;  %v3451_v18 = vpop.f32.mrb[1].mxu1  ;;  %v541_v19 = vpop.f32.mrb[2].mxu0 }
 0x10b   : > { %v607_v21 = vpop.f32.mrb[2].mxu1  ;;  %v3444_v22 = vpop.f32.mrb[3].mxu0  ;;  %v542_v26 = vadd.f32 %v3201_v13, %v541_v19  ;;  %v3712_v13 = vld [vmem:[%s3965_s17 + $0x18] sm:$0xff]   ;;  %v3243_v19 = vld [vmem:[%s3975_s30 + $0x5] ss:$0 sm:$0xff] }
 0x10c   : > { %v608_v23 = vadd.f32 %v3210_v12, %v607_v21  ;;  %v3452_v24 = vpop.f32.mrb[3].mxu1  ;;  %3462 = vmatpush3.xpose.msk.msra.mxu0 %vm677_vm3, %v605_v17 }
 0x10d   : > { %3471 = vmatprep.subr.mxu0 %v3843_v3  ;;  %v3234_v24 = vld [vmem:[%s3975_s30 + $0x1] ss:$0 sm:$0xff] }
 0x10e   : > { %3467 = vmatpush3.xpose.msk.msra.mxu1 %vm677_vm3, %v608_v23 }
 0x10f   : > { %3464 = vmatmul.mubr.msk.f32.vlgmr.msra.gmra.mrb[8].mxu0 %vm677_vm3, %v539_v20  ;;  %3476 = vmatprep.subr.mxu1 %v3843_v3 }
 0x110   : > { %v670_v27 = vpop.f32.mrb[4].mxu0  ;;  %3473 = vmatprep.mubr.msk.f32.mxu0 %vm3844_vm1, %v3843_v3 }
 0x111   : > { %3469 = vmatmul.mubr.msk.f32.vlgmr.msra.gmra.mrb[4].mxu1 %vm677_vm3, %v542_v26  ;;  %v671_v28 = vadd.f32 %v3219_v25, %v670_v27  ;;  %v3459_v29 = vpop.f32.mrb[5].mxu0 }
 0x112   : > { %v673_v30 = vpop.f32.mrb[6].mxu0  ;;  %3478 = vmatprep.mubr.msk.f32.mxu1 %vm3844_vm1, %v3843_v3 }
 0x113   : > { %v674_v31 = vadd.f32 %v3219_v25, %v673_v30  ;;  %v3460_v32 = vpop.f32.mrb[7].mxu0  ;;  %3472 = vmatpush3.msra.mxu0 %v671_v28 }
 0x114   : > { %3481 = vmatprep.subr.bf16.mxu0 %v3843_v3 }
 0x115   : > { %3477 = vmatpush3.msra.mxu1 %v674_v31 }
 0x116   : > { %3489 = vmatprep.subr.bf16.mxu1 %v3843_v3 }
 0x1e2   : > { %v750_v44 = vpop.f32.mrb[8].mxu0 }
 0x1e3   : > { %v3465_v45 = vpop.f32.mrb[9].mxu0  ;;  %v830_v48 = vmul.f32 0.35355338, %v750_v44 }
 0x1e4   : > { %v826_v47 = vpop.f32.mrb[4].mxu1 }
 0x1e5   : > { %v831_v49 = vmul.f32 0.35355338, %v826_v47  ;;  %v3470_v50 = vpop.f32.mrb[5].mxu1  ;;  %v842_v54 = vadd.f32 %v4062_v51, %v830_v48 }
 0x1e7   : > { %v843_v52 = vadd.f32 %v4059_v46, %v831_v49  ;;  %v844_v55 = vsel %vm677_vm3, %v842_v54, -inf }
 0x1e9   : > { %v847_v53 = vsel %vm677_vm3, %v843_v52, -inf }
 0x1ea   : > { %848 = vmax.xlane.f32.xlu0 %v847_v53 }
 0x1ee   : > { %845 = vmax.xlane.f32.xlu0 %v844_v55 }
 0x277   : > { %v849_v56 = vpop.xlane.xlu0 %848 }
 0x278   : > { %v851_v57 = vsub.f32 %v843_v52, %v849_v56 }
 0x27a   : > { %v854_v58 = vmul.f32 1.442695, %v851_v57 }
 0x27b   : > { %v846_v59 = vpop.xlane.xlu0 %845 }
 0x27c   : > { %3733 = vpow2.f32 %v854_v58  ;;  %v850_v60 = vsub.f32 %v842_v54, %v846_v59 }
 0x27e   : > { %v852_v61 = vmul.f32 1.442695, %v850_v60  ;;  %v3252_v60 = vld [vmem:[%s3975_s30 + $0x9] ss:$0 sm:$0xff] }
 0x280   : > { %3735 = vpow2.f32 %v852_v61 }
 0x286   : > { %v3734_v62 = vpop.eup %3733 }
 0x287   : > { %v859_v63 = vsel %vm677_vm3, %v3734_v62, 0.0 }
 0x288   : > { %860 = vadd.xlane.f32.xlu1 %v859_v63 }
 0x28a   : > { %v3736_v0 = vpop.eup %3735 }
 0x28b   : > { %v856_v1 = vsel %vm677_vm3, %v3736_v0, 0.0 }
 0x28c   : > { %857 = vadd.xlane.f32.xlu1 %v856_v1 }
 0x315   : > { %v861_v2 = vpop.xlane.xlu1 %860 }
 0x316   : > { %3737 = vrcp.f32 %v861_v2 }
 0x319   : > { %v858_v4 = vpop.xlane.xlu1 %857 }
 0x31a   : > { %3739 = vrcp.f32 %v858_v4 }
 0x320   : > { %v3738_v5 = vpop.eup %3737 }
 0x321   : > { %v865_v7 = vmul.f32 %v3738_v5, %v3734_v62 }
 0x323   : > { %3479 = vmatmul.mubr.msk.f32.vlgmr.msra.gmra.mrb[6].mxu1 %vm677_vm3, %v865_v7  ;;  %v1013_v7 = vld [vmem:[%s3960_s29] sm:$0xf] }
 0x324   : > { %v3740_v8 = vpop.eup %3739  ;;  %3490 = vmatpush3.bf16.msra.mxu1 %v3709_v6  ;;  %3493 = vmatprep.mubr.msk.bf16.mxu1 %vm3844_vm1, %v3843_v3 }
 0x325   : > { %v864_v12 = vmul.f32 %v3740_v8, %v3736_v0  ;;  %3491 = vmatprep.subr.bf16.mxu1 %v3843_v3 }
 0x327   : > { %3474 = vmatmul.mubr.msk.f32.vlgmr.msra.gmra.mrb[10].mxu0 %vm677_vm3, %v864_v12  ;;  %v3715_v12 = vld [vmem:[%s3965_s17 + $0x60] sm:$0xff]  }
 0x328   : > { %3482 = vmatpush3.bf16.msra.mxu0 %v3710_v10  ;;  %3492 = vmatpush3.bf16.msra.mxu1 %v3711_v11  ;;  %v1591_v11 = vsel %vm1542_vm4, %v1013_v7, 0 }
 0x329   : > { %3483 = vmatprep.subr.bf16.mxu0 %v3843_v3  ;;  %3485 = vmatprep.mubr.msk.bf16.mxu0 %vm3844_vm1, %v3843_v3 }
 0x32a   : > { %3505 = vmatprep.subr.mxu1 %v3843_v3 }
 0x32b   : > { %3494 = vmatmul.mubr.msk.bf16.vlgmr.msra.gmra.mrb[8].mxu1 %vm500_vm2, %v4014_v9 }
 0x32c   : > { %3484 = vmatpush3.bf16.msra.mxu0 %v3712_v13  ;;  %3507 = vmatprep.mubr.msk.f32.mxu1 %vm3844_vm1, %v3843_v3  ;;  %v3262_v13 = vld [vmem:[%s3960_s29 + $0x4] sm:$0xf] }
 0x32d   : > { %3497 = vmatprep.subr.bf16.mxu0 %v3843_v3 }
 0x32f   : > { %3486 = vmatmul.mubr.msk.bf16.vlgmr.msra.gmra.mrb[12].mxu0 %vm500_vm2, %v4014_v9 }
 0x330   : > { %3501 = vmatprep.mubr.msk.bf16.mxu0 %vm3844_vm1, %v3843_v3  ;;  %3498 = vmatpush3.bf16.msra.mxu0 %v3713_v33 }
 0x331   : > { %3499 = vmatprep.subr.bf16.mxu0 %v3843_v3 }
 0x334   : > { %3500 = vmatpush3.bf16.msra.mxu0 %v3714_v34 }
 0x335   : > { %3515 = vmatprep.subr.mxu0 %v3843_v3 }
 0x337   : > { %3502 = vmatmul.mubr.msk.bf16.vlgmr.msra.gmra.mrb[16].mxu0 %vm500_vm2, %v4014_v9 }
 0x338   : > { %3517 = vmatprep.mubr.msk.f32.mxu0 %vm3844_vm1, %v3843_v3 }
 0x3f6   : > { %v4092_v14 = vpop.f32.mrb[6].mxu1 }
 0x3f7   : > { %v3480_v15 = vpop.f32.mrb[7].mxu1 }
 0x3f8   : > { %v1544_v15 = vsel %vm1542_vm4, %v3262_v13, 0 }
 0x3fa   : > { %v4094_v16 = vpop.f32.mrb[10].mxu0 }
 0x3fb   : > { %v1012_v17 = vpack.c.bf16 %v4092_v14, %v4094_v16  ;;  %v3475_v18 = vpop.f32.mrb[11].mxu0 }
 0x3fc   : > { %v3716_v18 = vld [vmem:[%s3965_s17 + $0x68] sm:$0xff]  }
 0x3fe   : > { %v1139_v20 = vpop.f32.mrb[8].mxu1 }
 0x3ff   : > { %v1140_v21 = vadd.f32 %v3243_v19, %v1139_v20  ;;  %v3495_v22 = vpop.f32.mrb[9].mxu1 }
 0x400   : > { %v1142_v23 = vpop.f32.mrb[10].mxu1 }
 0x401   : > { %v3496_v25 = vpop.f32.mrb[11].mxu1  ;;  %3506 = vmatpush3.xpose.msk.msra.mxu1 %vm677_vm3, %v1140_v21  ;;  %v1143_v29 = vadd.f32 %v3243_v19, %v1142_v23  ;;  %v3717_v19 = vld [vmem:[%s3965_s17 + $0x20] sm:$0xff]   ;;  %v3718_v23 = vld [vmem:[%s3965_s17 + $0x28] sm:$0xff]  }
 0x402   : > { %v1073_v26 = vpop.f32.mrb[12].mxu0  ;;  %3510 = vmatprep.subr.mxu1 %v3843_v3 }
 0x403   : > { %v1074_v27 = vadd.f32 %v3234_v24, %v1073_v26  ;;  %v3487_v28 = vpop.f32.mrb[13].mxu0 }
 0x404   : > { %v1076_v30 = vpop.f32.mrb[14].mxu0 }
 0x405   : > { %v3488_v31 = vpop.f32.mrb[15].mxu0  ;;  %3508 = vmatmul.mubr.msk.f32.vlgmr.msra.gmra.mrb[12].mxu1 %vm677_vm3, %v1074_v27  ;;  %v1077_v32 = vadd.f32 %v3234_v24, %v1076_v30  ;;  %v3279_v27 = vld [vmem:[%s3975_s30 + $0x6] ss:$0 sm:$0xff] }
 0x406   : > { %3511 = vmatpush3.xpose.msk.msra.mxu1 %vm677_vm3, %v1143_v29  ;;  %3512 = vmatprep.mubr.msk.f32.mxu1 %vm3844_vm1, %v3843_v3 }
 0x407   : > { %3520 = vmatprep.subr.mxu1 %v3843_v3 }
 0x409   : > { %3513 = vmatmul.mubr.msk.f32.vlgmr.msra.gmra.mrb[14].mxu1 %vm677_vm3, %v1077_v32 }
 0x40a   : > { %3522 = vmatprep.mubr.msk.f32.mxu1 %vm3844_vm1, %v3843_v3  ;;  %v1205_v59 = vpop.f32.mrb[16].mxu0 }
 0x40b   : > { %v3503_v61 = vpop.f32.mrb[17].mxu0  ;;  %v1206_v62 = vadd.f32 %v3252_v60, %v1205_v59 }
 0x40c   : > { %v1208_v63 = vpop.f32.mrb[18].mxu0 }
 0x40d   : > { %v3504_v0 = vpop.f32.mrb[19].mxu0  ;;  %v1209_v1 = vadd.f32 %v3252_v60, %v1208_v63  ;;  %3516 = vmatpush3.msra.mxu0 %v1206_v62 }
 0x40e   : > { %3525 = vmatprep.subr.bf16.mxu0 %v3843_v3 }
 0x40f   : > { %3521 = vmatpush3.msra.mxu1 %v1209_v1 }
 0x410   : > { %3531 = vmatprep.subr.bf16.mxu1 %v3843_v3 }
 0x4d8   : > { %v1284_v35 = vpop.f32.mrb[12].mxu1 }
 0x4d9   : > { %v1364_v36 = vmul.f32 0.35355338, %v1284_v35  ;;  %v3509_v37 = vpop.f32.mrb[13].mxu1 }
 0x4db   : > { %v1366_v39 = vadd.f32 %v1364_v36, %v4062_v51 }
 0x4dc   : > { %v1360_v40 = vpop.f32.mrb[14].mxu1 }
 0x4dd   : > { %v1365_v41 = vmul.f32 0.35355338, %v1360_v40  ;;  %v3514_v43 = vpop.f32.mrb[15].mxu1  ;;  %v1368_v44 = vsel %vm677_vm3, %v1366_v39, -inf }
 0x4de   : > { %1369 = vmax.xlane.f32.xlu0 %v1368_v44 }
 0x4df   : > { %v1367_v45 = vadd.f32 %v1365_v41, %v4059_v46  ;;  %v3270_v41 = vld [vmem:[%s3975_s30 + $0x2] ss:$0 sm:$0xff] }
 0x4e1   : > { %v1371_v47 = vsel %vm677_vm3, %v1367_v45, -inf }
 0x4e2   : > { %1372 = vmax.xlane.f32.xlu1 %v1371_v47 }
 0x56b   : > { %v1370_v48 = vpop.xlane.xlu0 %1369 }
 0x56c   : > { %v1374_v49 = vsub.f32 %v1366_v39, %v1370_v48 }
 0x56e   : > { %v1376_v50 = vmul.f32 1.442695, %v1374_v49 }
 0x56f   : > { %v1373_v52 = vpop.xlane.xlu1 %1372 }
 0x570   : > { %3741 = vpow2.f32 %v1376_v50  ;;  %v1375_v53 = vsub.f32 %v1367_v45, %v1373_v52  ;;  %v3719_v50 = vld [vmem:[%s3965_s17 + $0xa0] sm:$0xff]   ;;  %v3720_v52 = vld [vmem:[%s3965_s17 + $0xa8] sm:$0xff]  }
 0x572   : > { %v1378_v54 = vmul.f32 1.442695, %v1375_v53 }
 0x574   : > { %3743 = vpow2.f32 %v1378_v54 }
 0x57a   : > { %v3742_v55 = vpop.eup %3741 }
 0x57b   : > { %v1380_v56 = vsel %vm677_vm3, %v3742_v55, 0.0 }
 0x57c   : > { %1381 = vadd.xlane.f32.xlu0 %v1380_v56 }
 0x57e   : > { %v3744_v57 = vpop.eup %3743 }
 0x57f   : > { %v1383_v58 = vsel %vm677_vm3, %v3744_v57, 0.0 }
 0x580   : > { %1384 = vadd.xlane.f32.xlu1 %v1383_v58 }
 0x609   : > { %v1382_v2 = vpop.xlane.xlu0 %1381 }
 0x60a   : > { %3745 = vrcp.f32 %v1382_v2 }
 0x60d   : > { %v1385_v4 = vpop.xlane.xlu1 %1384 }
 0x60e   : > { %3747 = vrcp.f32 %v1385_v4 }
 0x614   : > { %v3746_v5 = vpop.eup %3745 }
 0x615   : > { %v1388_v6 = vmul.f32 %v3746_v5, %v3742_v55 }
 0x617   : > { %3518 = vmatmul.mubr.msk.f32.vlgmr.msra.gmra.mrb[20].mxu0 %vm677_vm3, %v1388_v6 }
 0x618   : > { %v3748_v8 = vpop.eup %3747  ;;  %3527 = vmatprep.mubr.msk.bf16.mxu0 %vm3844_vm1, %v3843_v3  ;;  %3526 = vmatpush3.bf16.msra.mxu0 %v1544_v15 }
 0x619   : > { %v1389_v10 = vmul.f32 %v3748_v8, %v3744_v57  ;;  %3537 = vmatprep.subr.bf16.mxu0 %v3843_v3 }
 0x61b   : > { %3523 = vmatmul.mubr.msk.f32.vlgmr.msra.gmra.mrb[16].mxu1 %vm677_vm3, %v1389_v10 }
 0x61c   : > { %3532 = vmatpush3.bf16.msra.mxu1 %v1591_v11  ;;  %3533 = vmatprep.mubr.msk.bf16.mxu1 %vm3844_vm1, %v3843_v3 }
 0x61d   : > { %3545 = vmatprep.subr.bf16.mxu1 %v3843_v3 }
 0x61f   : > { %3534 = vmatmul.mubr.msk.bf16.vlgmr.msra.gmra.mrb[20].mxu1 %vm677_vm3, %v1012_v17 }
 0x620   : > { %3549 = vmatprep.mubr.msk.bf16.mxu1 %vm3844_vm1, %v3843_v3  ;;  %3546 = vmatpush3.bf16.msra.mxu1 %v3715_v12  ;;  %v3288_v12 = vld [vmem:[%s3975_s30 + $0xa] ss:$0 sm:$0xff] }
 0x621   : > { %3547 = vmatprep.subr.bf16.mxu1 %v3843_v3 }
 0x624   : > { %3548 = vmatpush3.bf16.msra.mxu1 %v3716_v18 }
 0x625   : > { %3561 = vmatprep.subr.mxu1 %v3843_v3 }
 0x627   : > { %3550 = vmatmul.mubr.msk.bf16.vlgmr.msra.gmra.mrb[24].mxu1 %vm500_vm2, %v4014_v9 }
 0x628   : > { %3563 = vmatprep.mubr.msk.f32.mxu1 %vm3844_vm1, %v3843_v3 }
 0x6ea   : > { %v1459_v14 = vpop.f32.mrb[20].mxu0 }
 0x6eb   : > { %v3519_v16 = vpop.f32.mrb[21].mxu0 }
 0x6ee   : > { %v1532_v17 = vpop.f32.mrb[16].mxu1 }
 0x6ef   : > { %v1536_v20 = vpack.c.bf16 %v1532_v17, %v1459_v14  ;;  %v3524_v21 = vpop.f32.mrb[17].mxu1 }
 0x6f1   : > { %3528 = vmatmul.mubr.msk.bf16.vlgmr.msra.gmra.mrb[24].mxu0 %vm677_vm3, %v1536_v20 }
 0x6f2   : > { %v1627_v22 = vpop.f32.mrb[20].mxu1  ;;  %3538 = vmatpush3.bf16.msra.mxu0 %v3717_v19  ;;  %3541 = vmatprep.mubr.msk.bf16.mxu0 %vm3844_vm1, %v3843_v3 }
 0x6f3   : > { %v3535_v24 = vpop.f32.mrb[21].mxu1  ;;  %3539 = vmatprep.subr.bf16.mxu0 %v3843_v3 }
 0x6f4   : > { %v1630_v25 = vpop.f32.mrb[22].mxu1  ;;  %v3298_v24 = vld [vmem:[%s3960_s29 + $0x8] sm:$0xf] }
 0x6f5   : > { %v3536_v26 = vpop.f32.mrb[23].mxu1 }
 0x6f6   : > { %3540 = vmatpush3.bf16.msra.mxu0 %v3718_v23  ;;  %v3722_v26 = vld [vmem:[%s3965_s17 + $0x30] sm:$0xff]  }
 0x6f7   : > { %3553 = vmatprep.subr.bf16.mxu0 %v3843_v3 }
 0x6f9   : > { %3542 = vmatmul.mubr.msk.bf16.vlgmr.msra.gmra.mrb[28].mxu0 %vm500_vm2, %v4014_v9 }
 0x6fa   : > { %3557 = vmatprep.mubr.msk.bf16.mxu0 %vm3844_vm1, %v3843_v3  ;;  %v1759_v28 = vpop.f32.mrb[24].mxu1  ;;  %3554 = vmatpush3.bf16.msra.mxu0 %v3719_v50  ;;  %v3314_v50 = vld [vmem:[%s3975_s30 + $0x7] ss:$0 sm:$0xff] }
 0x6fb   : > { %v1760_v29 = vadd.f32 %v3279_v27, %v1759_v28  ;;  %v3551_v30 = vpop.f32.mrb[25].mxu1  ;;  %3555 = vmatprep.subr.bf16.mxu0 %v3843_v3 }
 0x6fc   : > { %v1762_v31 = vpop.f32.mrb[26].mxu1 }
 0x6fd   : > { %v1763_v32 = vadd.f32 %v3279_v27, %v1762_v31  ;;  %v3552_v33 = vpop.f32.mrb[27].mxu1  ;;  %3562 = vmatpush3.xpose.msk.msra.mxu1 %vm677_vm3, %v1760_v29  ;;  %v3724_v27 = vld [vmem:[%s3965_s17 + $0x38] sm:$0xff]   ;;  %v3721_v31 = vld [vmem:[%s3965_s17 + $0x70] sm:$0xff]  }
 0x6fe   : > { %3566 = vmatprep.subr.mxu1 %v3843_v3  ;;  %3556 = vmatpush3.bf16.msra.mxu0 %v3720_v52  ;;  %v3305_v52 = vld [vmem:[%s3975_s30 + $0x3] ss:$0 sm:$0xff] }
 0x6ff   : > { %3571 = vmatprep.subr.mxu0 %v3843_v3 }
 0x701   : > { %3558 = vmatmul.mubr.msk.bf16.vlgmr.msra.gmra.mrb[32].mxu0 %vm500_vm2, %v4014_v9 }
 0x702   : > { %3573 = vmatprep.mubr.msk.f32.mxu0 %vm3844_vm1, %v3843_v3 }
 0x7c4   : > { %v1580_v34 = vpop.f32.mrb[24].mxu0 }
 0x7c5   : > { %v4167_v35 = vadd.f32 %v1627_v22, %v1580_v34  ;;  %v3529_v36 = vpop.f32.mrb[25].mxu0  ;;  %v3723_v34 = vld [vmem:[%s3965_s17 + $0x78] sm:$0xff]  }
 0x7c6   : > { %v1583_v37 = vpop.f32.mrb[26].mxu0 }
 0x7c7   : > { %v4169_v39 = vadd.f32 %v1630_v25, %v1583_v37  ;;  %v3530_v40 = vpop.f32.mrb[27].mxu0  ;;  %v2163_v25 = vsel %vm1542_vm4, %v3298_v24, 0 }
 0x7cc   : > { %v1693_v43 = vpop.f32.mrb[28].mxu0 }
 0x7cd   : > { %v1694_v44 = vadd.f32 %v3270_v41, %v1693_v43  ;;  %v3543_v45 = vpop.f32.mrb[29].mxu0 }
 0x7ce   : > { %v1696_v47 = vpop.f32.mrb[30].mxu0 }
 0x7cf   : > { %v3544_v48 = vpop.f32.mrb[31].mxu0  ;;  %3564 = vmatmul.mubr.msk.f32.vlgmr.msra.gmra.mrb[18].mxu1 %vm677_vm3, %v1694_v44  ;;  %v1697_v49 = vadd.f32 %v3270_v41, %v1696_v47 }
 0x7d0   : > { %3567 = vmatpush3.xpose.msk.msra.mxu1 %vm677_vm3, %v1763_v32  ;;  %3568 = vmatprep.mubr.msk.f32.mxu1 %vm3844_vm1, %v3843_v3 }
 0x7d1   : > { %3576 = vmatprep.subr.mxu1 %v3843_v3 }
 0x7d3   : > { %3569 = vmatmul.mubr.msk.f32.vlgmr.msra.gmra.mrb[28].mxu1 %vm677_vm3, %v1697_v49 }
 0x7d4   : > { %3578 = vmatprep.mubr.msk.f32.mxu1 %vm3844_vm1, %v3843_v3  ;;  %v1825_v11 = vpop.f32.mrb[32].mxu0 }
 0x7d5   : > { %v3559_v13 = vpop.f32.mrb[33].mxu0  ;;  %v1826_v15 = vadd.f32 %v3288_v12, %v1825_v11 }
 0x7d6   : > { %v1828_v18 = vpop.f32.mrb[34].mxu0 }
 0x7d7   : > { %v3560_v14 = vpop.f32.mrb[35].mxu0  ;;  %v1829_v16 = vadd.f32 %v3288_v12, %v1828_v18  ;;  %3572 = vmatpush3.msra.mxu0 %v1826_v15 }
 0x7d8   : > { %3581 = vmatprep.subr.bf16.mxu0 %v3843_v3 }
 0x7d9   : > { %3577 = vmatpush3.msra.mxu1 %v1829_v16  ;;  %v3323_v16 = vld [vmem:[%s3975_s30 + $0xb] ss:$0 sm:$0xff] }
 0x7da   : > { %3587 = vmatprep.subr.bf16.mxu1 %v3843_v3 }
 0x8a2   : > { %v1904_v53 = vpop.f32.mrb[18].mxu1 }
 0x8a3   : > { %v1984_v54 = vmul.f32 0.35355338, %v1904_v53  ;;  %v3565_v55 = vpop.f32.mrb[19].mxu1 }
 0x8a5   : > { %v1986_v56 = vadd.f32 %v1984_v54, %v4062_v51 }
 0x8a6   : > { %v1980_v57 = vpop.f32.mrb[28].mxu1 }
 0x8a7   : > { %v1985_v58 = vmul.f32 0.35355338, %v1980_v57  ;;  %v3570_v59 = vpop.f32.mrb[29].mxu1  ;;  %v1988_v60 = vsel %vm677_vm3, %v1986_v56, -inf }
 0x8a8   : > { %1989 = vmax.xlane.f32.xlu0 %v1988_v60  ;;  %v3725_v59 = vld [vmem:[%s3965_s17 + $0xb0] sm:$0xff]   ;;  %v3726_v60 = vld [vmem:[%s3965_s17 + $0xb8] sm:$0xff]   ;;  %s4402_s17 = sld [smem:[#allocation14_spill]] }
 0x8a9   : > { %v1987_v61 = vadd.f32 %v1985_v58, %v4059_v46 }
 0x8ab   : > { %v1991_v62 = vsel %vm677_vm3, %v1987_v61, -inf }
 0x8ac   : > { %1992 = vmax.xlane.f32.xlu1 %v1991_v62 }
 0x8ae   : > { %s4318_s27 = scalar_lea.hbm %s4402_s17, %s3352_s22 }
 0x935   : > { %v1990_v63 = vpop.xlane.xlu0 %1989 }
 0x936   : > { %v1994_v0 = vsub.f32 %v1986_v56, %v1990_v63 }
 0x938   : > { %v1996_v1 = vmul.f32 1.442695, %v1994_v0 }
 0x939   : > { %v1993_v2 = vpop.xlane.xlu1 %1992 }
 0x93a   : > { %3749 = vpow2.f32 %v1996_v1  ;;  %v1995_v4 = vsub.f32 %v1987_v61, %v1993_v2 }
 0x93c   : > { %v1998_v5 = vmul.f32 1.442695, %v1995_v4 }
 0x93e   : > { %3751 = vpow2.f32 %v1998_v5 }
 0x944   : > { %v3750_v6 = vpop.eup %3749 }
 0x945   : > { %v2000_v7 = vsel %vm677_vm3, %v3750_v6, 0.0 }
 0x946   : > { %2001 = vadd.xlane.f32.xlu0 %v2000_v7 }
 0x948   : > { %v3752_v8 = vpop.eup %3751 }
 0x949   : > { %v2003_v10 = vsel %vm677_vm3, %v3752_v8, 0.0 }
 0x94a   : > { %2004 = vadd.xlane.f32.xlu1 %v2003_v10 }
 0x9d3   : > { %v2002_v17 = vpop.xlane.xlu0 %2001 }
 0x9d4   : > { %3753 = vrcp.f32 %v2002_v17 }
 0x9d7   : > { %v2005_v19 = vpop.xlane.xlu1 %2004 }
 0x9d8   : > { %3755 = vrcp.f32 %v2005_v19 }
 0x9de   : > { %v3754_v20 = vpop.eup %3753 }
 0x9df   : > { %v2008_v21 = vmul.f32 %v3754_v20, %v3750_v6 }
 0x9e1   : > { %3574 = vmatmul.mubr.msk.f32.vlgmr.msra.gmra.mrb[22].mxu0 %vm677_vm3, %v2008_v21 }
 0x9e2   : > { %v3756_v22 = vpop.eup %3755  ;;  %3583 = vmatprep.mubr.msk.bf16.mxu0 %vm3844_vm1, %v3843_v3  ;;  %3582 = vmatpush3.bf16.msra.mxu0 %v2163_v25 }
 0x9e3   : > { %v2009_v23 = vmul.f32 %v3756_v22, %v3752_v8  ;;  %3595 = vmatprep.subr.bf16.mxu0 %v3843_v3 }
 0x9e5   : > { %3579 = vmatmul.mubr.msk.f32.vlgmr.msra.gmra.mrb[30].mxu1 %vm677_vm3, %v2009_v23 }
 0x9e6   : > { %3591 = vmatprep.mubr.msk.bf16.mxu1 %vm3844_vm1, %v3843_v3  ;;  %3588 = vmatpush3.bf16.msra.mxu1 %v3722_v26 }
 0x9e7   : > { %3589 = vmatprep.subr.bf16.mxu1 %v3843_v3 }
 0x9ea   : > { %3590 = vmatpush3.bf16.msra.mxu1 %v3724_v27 }
 0x9eb   : > { %3603 = vmatprep.subr.bf16.mxu1 %v3843_v3 }
 0x9ed   : > { %3592 = vmatmul.mubr.msk.bf16.vlgmr.msra.gmra.mrb[32].mxu1 %vm500_vm2, %v4014_v9 }
 0x9ee   : > { %3607 = vmatprep.mubr.msk.bf16.mxu1 %vm3844_vm1, %v3843_v3  ;;  %3604 = vmatpush3.bf16.msra.mxu1 %v3725_v59 }
 0x9ef   : > { %3605 = vmatprep.subr.bf16.mxu1 %v3843_v3 }
 0x9f2   : > { %3606 = vmatpush3.bf16.msra.mxu1 %v3726_v60 }
 0x9f3   : > { %3621 = vmatprep.subr.mxu1 %v3843_v3 }
 0x9f5   : > { %3608 = vmatmul.mubr.msk.bf16.vlgmr.msra.gmra.mrb[36].mxu1 %vm500_vm2, %v4014_v9 }
 0x9f6   : > { %3623 = vmatprep.mubr.msk.f32.mxu1 %vm3844_vm1, %v3843_v3 }
 0xab4   : > { %v2079_v28 = vpop.f32.mrb[22].mxu0 }
 0xab5   : > { %v3575_v29 = vpop.f32.mrb[23].mxu0 }
 0xab6   : > { %v3333_v29 = vld [vmem:[%s3960_s29 + $0xc] sm:$0xf] }
 0xab8   : > { %v2152_v30 = vpop.f32.mrb[30].mxu1 }
 0xab9   : > { %v2156_v32 = vpack.c.bf16 %v2152_v30, %v2079_v28  ;;  %v3580_v33 = vpop.f32.mrb[31].mxu1  ;;  %v2737_v30 = vsel %vm1542_vm4, %v3333_v29, 0 }
 0xabb   : > { %3584 = vmatmul.mubr.msk.bf16.vlgmr.msra.gmra.mrb[36].mxu0 %vm677_vm3, %v2156_v32 }
 0xabc   : > { %3596 = vmatpush3.bf16.msra.mxu0 %v3721_v31  ;;  %3599 = vmatprep.mubr.msk.bf16.mxu0 %vm3844_vm1, %v3843_v3 }
 0xabd   : > { %3597 = vmatprep.subr.bf16.mxu0 %v3843_v3 }
 0xac0   : > { %3598 = vmatpush3.bf16.msra.mxu0 %v3723_v34  ;;  %v2267_v36 = vpop.f32.mrb[32].mxu1 }
 0xac1   : > { %3611 = vmatprep.subr.mxu0 %v3843_v3  ;;  %v3593_v37 = vpop.f32.mrb[33].mxu1  ;;  %v2268_v57 = vadd.f32 %v3305_v52, %v2267_v36 }
 0xac2   : > { %v2270_v40 = vpop.f32.mrb[34].mxu1  ;;  %v4273_v37 = vld [vmem:[%s3991_s21] sm:$0x3f] }
 0xac3   : > { %3600 = vmatmul.mubr.msk.bf16.vlgmr.msra.gmra.mrb[40].mxu0 %vm500_vm2, %v4014_v9  ;;  %v3594_v41 = vpop.f32.mrb[35].mxu1 }
 0xac4   : > { %3613 = vmatprep.mubr.msk.f32.mxu0 %vm3844_vm1, %v3843_v3 }
 0xb8e   : > { %v2199_v43 = vpop.f32.mrb[36].mxu0 }
 0xb8f   : > { %v4226_v44 = vadd.f32 %v2199_v43, %v4167_v35  ;;  %v3585_v45 = vpop.f32.mrb[37].mxu0 }
 0xb90   : > { %v2202_v47 = vpop.f32.mrb[38].mxu0 }
 0xb91   : > { %v4229_v48 = vadd.f32 %v2202_v47, %v4169_v39  ;;  %v3586_v49 = vpop.f32.mrb[39].mxu0  ;;  %v2271_v39 = vadd.f32 %v3305_v52, %v2270_v40  ;;  %v2785_v40 = vrot.slane %v4273_v37, %v4056_v42 }
 0xb96   : > { %v2333_v53 = vpop.f32.mrb[40].mxu0 }
 0xb97   : > { %v2334_v54 = vadd.f32 %v3314_v50, %v2333_v53  ;;  %v3601_v55 = vpop.f32.mrb[41].mxu0 }
 0xb98   : > { %v2336_v56 = vpop.f32.mrb[42].mxu0 }
 0xb99   : > { %v3602_v58 = vpop.f32.mrb[43].mxu0  ;;  %3612 = vmatpush3.xpose.msk.msra.mxu0 %vm677_vm3, %v2334_v54  ;;  %v2337_v35 = vadd.f32 %v3314_v50, %v2336_v56  ;;  %v3777_v54 = vld [vmem:[#allocation2] sm:$0xff] }
 0xb9a   : > { %3616 = vmatprep.subr.mxu0 %v3843_v3 }
 0xb9c   : > { %3614 = vmatmul.mubr.msk.f32.vlgmr.msra.gmra.mrb[44].mxu0 %vm677_vm3, %v2268_v57  ;;  %v3778_v57 = vld [vmem:[#allocation2 + $0x8] sm:$0xff] }
 0xb9d   : > { %3617 = vmatpush3.xpose.msk.msra.mxu0 %vm677_vm3, %v2337_v35  ;;  %3618 = vmatprep.mubr.msk.f32.mxu0 %vm3844_vm1, %v3843_v3 }
 0xb9e   : > { %3626 = vmatprep.subr.mxu0 %v3843_v3 }
 0xba0   : > { %3619 = vmatmul.mubr.msk.f32.vlgmr.msra.gmra.mrb[46].mxu0 %vm677_vm3, %v2271_v39 }
 0xba1   : > { %3628 = vmatprep.mubr.msk.f32.mxu0 %vm3844_vm1, %v3843_v3 }
 0xc6f   : > { %v2478_v61 = vpop.f32.mrb[44].mxu0 }
 0xc70   : > { %v2558_v62 = vmul.f32 0.35355338, %v2478_v61  ;;  %v3615_v63 = vpop.f32.mrb[45].mxu0 }
 0xc72   : > { %v2560_v0 = vadd.f32 %v2558_v62, %v4062_v51 }
 0xc73   : > { %v2554_v1 = vpop.f32.mrb[46].mxu0 }
 0xc74   : > { %v2559_v2 = vmul.f32 0.35355338, %v2554_v1  ;;  %v3620_v4 = vpop.f32.mrb[47].mxu0  ;;  %v2562_v5 = vsel %vm677_vm3, %v2560_v0, -inf  ;;  %v3727_v1 = vld [vmem:[%s3970_s11] sm:$0xff]  }
 0xc75   : > { %2563 = vmax.xlane.f32.xlu0 %v2562_v5 }
 0xc76   : > { %v2561_v6 = vadd.f32 %v2559_v2, %v4059_v46  ;;  %v2399_v46 = vpop.f32.mrb[36].mxu1  ;;  %v3728_v2 = vld [vmem:[%s3970_s11 + $0x8] sm:$0xff]  }
 0xc77   : > { %v3609_v17 = vpop.f32.mrb[37].mxu1  ;;  %v2400_v19 = vadd.f32 %v3323_v16, %v2399_v46 }
 0xc78   : > { %v2565_v7 = vsel %vm677_vm3, %v2561_v6, -inf  ;;  %v2402_v20 = vpop.f32.mrb[38].mxu1 }
 0xc79   : > { %2566 = vmax.xlane.f32.xlu1 %v2565_v7  ;;  %v3610_v21 = vpop.f32.mrb[39].mxu1  ;;  %v2403_v22 = vadd.f32 %v3323_v16, %v2402_v20  ;;  %3622 = vmatpush3.msra.mxu1 %v2400_v19 }
 0xc7a   : > { %3631 = vmatprep.subr.bf16.mxu1 %v3843_v3  ;;  %v3729_v21 = vld [vmem:[%s3981_s28] sm:$0xff]  }
 0xc7b   : > { %3627 = vmatpush3.msra.mxu0 %v2403_v22  ;;  %v3730_v22 = vld [vmem:[%s3981_s28 + $0x8] sm:$0xff]  }
 0xc7c   : > { %3637 = vmatprep.subr.bf16.mxu0 %v3843_v3 }
 0xd02   : > { %v2564_v9 = vpop.xlane.xlu0 %2563 }
 0xd03   : > { %v2568_v8 = vsub.f32 %v2560_v0, %v2564_v9 }
 0xd05   : > { %v2570_v10 = vmul.f32 1.442695, %v2568_v8 }
 0xd06   : > { %v2567_v11 = vpop.xlane.xlu1 %2566 }
 0xd07   : > { %3757 = vpow2.f32 %v2570_v10  ;;  %v2569_v12 = vsub.f32 %v2561_v6, %v2567_v11  ;;  %v2819_v10 = vsub.s32 1, %v4052_v38 }
 0xd09   : > { %v2572_v13 = vmul.f32 1.442695, %v2569_v12  ;;  %v2820_v11 = vrot.slane %v4273_v37, %v2819_v10  ;;  %v2825_v12 = vsub.s32 2, %v4052_v38 }
 0xd0b   : > { %3759 = vpow2.f32 %v2572_v13  ;;  %v2826_v46 = vrot.slane %v4273_v37, %v2825_v12 }
 0xd11   : > { %v3758_v51 = vpop.eup %3757 }
 0xd12   : > { %v2574_v15 = vsel %vm677_vm3, %v3758_v51, 0.0 }
 0xd13   : > { %2575 = vadd.xlane.f32.xlu0 %v2574_v15 }
 0xd15   : > { %v3760_v18 = vpop.eup %3759 }
 0xd16   : > { %v2577_v14 = vsel %vm677_vm3, %v3760_v18, 0.0 }
 0xd17   : > { %2578 = vadd.xlane.f32.xlu1 %v2577_v14 }
 0xda0   : > { %v2576_v23 = vpop.xlane.xlu0 %2575 }
 0xda1   : > { %3761 = vrcp.f32 %v2576_v23  ;;  %v3731_v23 = vld [vmem:[%s3981_s28 + $0x10] sm:$0xff]  }
 0xda4   : > { %v2579_v24 = vpop.xlane.xlu1 %2578 }
 0xda5   : > { %3763 = vrcp.f32 %v2579_v24  ;;  %v3732_v24 = vld [vmem:[%s3981_s28 + $0x18] sm:$0xff]   ;;  %s4330_s28 = scalar_lea.sflag [#allocation4], %s4403_s13 }
 0xdab   : > { %v3762_v25 = vpop.eup %3761 }
 0xdac   : > { %v2582_v26 = vmul.f32 %v3762_v25, %v3758_v51  ;;  %v3335_v25 = vld [vmem:[%s434_s24] ss:$0 sm:$0xff]  ;;  %s3846_s24 = smov [#allocation3]  }
 0xdad   : > { %s3783_s16 = sshll.u32 %s3846_s24, 4  ;;  %s3784_s16 = int_to_ptr.vmem [resolvable:$false] %s3783_s16 }
 0xdae   : > { %3624 = vmatmul.mubr.msk.f32.vlgmr.msra.gmra.mrb[40].mxu1 %vm677_vm3, %v2582_v26  ;;  %s3785_s18 = scalar_lea.vmem %s3784_s16, 512  ;;  %p3786_p1 = scmp.lt.s32.totalorder %s4320_s23, %s3784_s16 }
 0xdaf   : > { %v3764_v27 = vpop.eup %3763  ;;  %3633 = vmatprep.mubr.msk.bf16.mxu1 %vm3844_vm1, %v3843_v3  ;;  %3632 = vmatpush3.bf16.msra.mxu1 %v2737_v30  ;;  %p3787_p2 = scmp.lt.s32.totalorder %s3785_s18, %s3779_s14 }
 0xdb0   : > { %v2583_v28 = vmul.f32 %v3764_v27, %v3760_v18  ;;  %3645 = vmatprep.subr.bf16.mxu1 %v3843_v3 }
 0xdb1   : > { %p3788_p3 = por %p3787_p2, %p3786_p1 }
 0xdb2   : > { %3629 = vmatmul.mubr.msk.f32.vlgmr.msra.gmra.mrb[48].mxu0 %vm677_vm3, %v2583_v28 }
 0xdb3   : > { %3641 = vmatprep.mubr.msk.bf16.mxu0 %vm3844_vm1, %v3843_v3  ;;  %3638 = vmatpush3.bf16.msra.mxu0 %v3727_v1  ;;  %p3789_p4 = pnand %p3788_p3, %p3782_p0 }
 0xdb4   : > { %3639 = vmatprep.subr.bf16.mxu0 %v3843_v3 }
 0xdb7   : > { %3640 = vmatpush3.bf16.msra.mxu0 %v3728_v2 }
 0xe81   : > { %v2653_v31 = vpop.f32.mrb[40].mxu1 }
 0xe82   : > { %v3625_v32 = vpop.f32.mrb[41].mxu1 }
 0xe85   : > { %v2726_v33 = vpop.f32.mrb[48].mxu0 }
 0xe86   : > { %v2730_v34 = vpack.c.bf16 %v2726_v33, %v2653_v31  ;;  %v3630_v36 = vpop.f32.mrb[49].mxu0 }
 0xe88   : > { %3634 = vmatmul.mubr.msk.bf16.vlgmr.msra.gmra.mrb[44].mxu1 %vm677_vm3, %v2730_v34 }
 0xe89   : > { %3653 = vmatprep.mubr.msk.bf16.mxu1 %vm3844_vm1, %v3843_v3  ;;  %3646 = vmatpush3.bf16.msra.mxu1 %v3729_v21 }
 0xe8a   : > { %3647 = vmatprep.subr.bf16.mxu1 %v3843_v3 }
 0xe8d   : > { %3648 = vmatpush3.bf16.msra.mxu1 %v3730_v22 }
 0xe8e   : > { %3649 = vmatprep.subr.bf16.mxu1 %v3843_v3 }
 0xe91   : > { %3650 = vmatpush3.bf16.msra.mxu1 %v3731_v23 }
 0xe92   : > { %3651 = vmatprep.subr.bf16.mxu1 %v3843_v3 }
 0xe95   : > { %3652 = vmatpush3.bf16.msra.mxu1 %v3732_v24 }
 0xf5b   : > { %v2773_v41 = vpop.f32.mrb[44].mxu1 }
 0xf5c   : > { %v2780_v43 = vadd.f32 %v2773_v41, %v4226_v44  ;;  %v3635_v45 = vpop.f32.mrb[45].mxu1 }
 0xf5d   : > { %v2776_v47 = vpop.f32.mrb[46].mxu1 }
 0xf5e   : > { %v2786_v49 = vadd.f32 %v2785_v40, %v2780_v43  ;;  %v2781_v50 = vadd.f32 %v2776_v47, %v4229_v48  ;;  %v3636_v52 = vpop.f32.mrb[47].mxu1 }
 0xf60   : > { %v2787_v53 = vadd.f32 %v2785_v40, %v2781_v50  ;;  %v2788_v55 = vadd.f32 %v3777_v54, %v2786_v49 }
 0xf62   : > { %v2790_v56 = vsel %vm500_vm2, %v2788_v55, 0.0  ;;  %v2789_v58 = vadd.f32 %v3778_v57, %v2787_v53 }
 0xf63   : > { %2791 = vadd.xlane.f32.xlu0 %v2790_v56 }
 0xf64   : > { %v2793_v42 = vsel %vm500_vm2, %v2789_v58, 0.0 }
 0xf65   : > { %2794 = vadd.xlane.f32.xlu1 %v2793_v42  ;;  %v2926_v42 = vsub.s32 3, %v4052_v38 }
 0xff0   : > { %v2792_v44 = vpop.xlane.xlu0 %2791 }
 0xff1   : > { %v2797_v35 = vmul.f32 0.03125, %v2792_v44  ;;  %v2927_v44 = vrot.slane %v4273_v37, %v2926_v42 }
 0xff2   : > { %v2795_v39 = vpop.xlane.xlu1 %2794 }
 0xff3   : > { %v2799_v59 = vsub.f32 %v2788_v55, %v2797_v35  ;;  %v2798_v60 = vmul.f32 0.03125, %v2795_v39 }
 0xff5   : > { %v2800_v48 = vsub.f32 %v2789_v58, %v2798_v60  ;;  %v2801_v61 = vmul.f32 %v2799_v59, %v2799_v59 }
 0xff7   : > { %v2803_v62 = vsel %vm500_vm2, %v2801_v61, 0.0  ;;  %v2802_v63 = vmul.f32 %v2800_v48, %v2800_v48 }
 0xff8   : > { %2804 = vadd.xlane.f32.xlu0 %v2803_v62 }
 0xff9   : > { %v2806_v0 = vsel %vm500_vm2, %v2802_v63, 0.0 }
 0xffa   : > { %2807 = vadd.xlane.f32.xlu1 %v2806_v0 }
0x1085   : > { %v2805_v4 = vpop.xlane.xlu0 %2804 }
0x1086   : > { %v2809_v5 = vmul.f32 0.03125, %v2805_v4 }
0x1087   : > { %v2808_v6 = vpop.xlane.xlu1 %2807 }
0x1088   : > { %v2811_v7 = vadd.f32 1e-12, %v2809_v5  ;;  %v2810_v9 = vmul.f32 0.03125, %v2808_v6 }
0x108a   : > { %3765 = vrsqrt.f32 %v2811_v7  ;;  %v2812_v8 = vadd.f32 1e-12, %v2810_v9 }
0x108c   : > { %3767 = vrsqrt.f32 %v2812_v8 }
0x1094   : > { %v3766_v13 = vpop.eup %3765 }
0x1095   : > { %v2815_v51 = vmul.f32 %v3766_v13, %v2799_v59 }
0x1096   : > { %v3768_v15 = vpop.eup %3767 }
0x1097   : > { %v2821_v18 = vmul.f32 %v2820_v11, %v2815_v51  ;;  %v2816_v14 = vmul.f32 %v3768_v15, %v2800_v48 }
0x1099   : > { %v2822_v16 = vmul.f32 %v2820_v11, %v2816_v14  ;;  %v2827_v17 = vadd.f32 %v2826_v46, %v2821_v18 }
0x109b   : > { %v2828_v19 = vadd.f32 %v2826_v46, %v2822_v16  ;;  %v3027_v16 = vsub.s32 4, %v4052_v38 }
0x109d   : > { %v2829_v20 = vpack.c.bf16 %v2828_v19, %v2827_v17 }
0x109f   : > { %3642 = vmatmul.mubr.msk.bf16.vlgmr.msra.gmra.mrb[52].mxu0 %vm500_vm2, %v2829_v20 }
0x1172   : > { %v2890_v26 = vpop.f32.mrb[52].mxu0 }
0x1173   : > { %v2891_v27 = vadd.f32 %v3335_v25, %v2890_v26  ;;  %v3643_v28 = vpop.f32.mrb[53].mxu0 }
0x1174   : > { %v2893_v29 = vpop.f32.mrb[54].mxu0 }
0x1175   : > { %v2899_v30 = vmul.f32 %v2891_v27, %v2891_v27  ;;  %v2894_v31 = vadd.f32 %v3335_v25, %v2893_v29  ;;  %v3644_v32 = vpop.f32.mrb[55].mxu0  ;;  %v2897_v53 = vmul.f32 0.5, %v2891_v27 }
0x1177   : > { %v2901_v33 = vmul.f32 %v2899_v30, %v2891_v27  ;;  %v2900_v34 = vmul.f32 %v2894_v31, %v2894_v31  ;;  %v2898_v54 = vmul.f32 0.5, %v2894_v31 }
0x1179   : > { %v2903_v36 = vmul.f32 0.044715, %v2901_v33  ;;  %v2902_v40 = vmul.f32 %v2900_v34, %v2894_v31 }
0x117b   : > { %v2905_v41 = vadd.f32 %v2903_v36, %v2891_v27  ;;  %v2904_v3 = vmul.f32 0.044715, %v2902_v40 }
0x117d   : > { %v2907_v43 = vmul.f32 0.7978846, %v2905_v41  ;;  %v2906_v45 = vadd.f32 %v2904_v3, %v2894_v31 }
0x117f   : > { %3769 = vtanh.f32 %v2907_v43  ;;  %v2908_v47 = vmul.f32 0.7978846, %v2906_v45 }
0x1181   : > { %3771 = vtanh.f32 %v2908_v47 }
0x1189   : > { %v3770_v49 = vpop.eup %3769 }
0x118a   : > { %v2911_v50 = vadd.f32 1.0, %v3770_v49 }
0x118b   : > { %v3772_v52 = vpop.eup %3771 }
0x118c   : > { %v2912_v55 = vadd.f32 1.0, %v3772_v52  ;;  %v2913_v56 = vmul.f32 %v2911_v50, %v2897_v53 }
0x118e   : > { %v2914_v57 = vmul.f32 %v2912_v55, %v2898_v54 }
0x1190   : > { %v2915_v58 = vpack.c.bf16 %v2914_v57, %v2913_v56 }
0x1192   : > { %3654 = vmatmul.mubr.msk.bf16.vlgmr.msra.gmra.mrb[48].mxu1 %vm2952_vm5, %v2915_v58 }
0x1265   : > { %v2990_v35 = vpop.f32.mrb[48].mxu1 }
0x1266   : > { %v2991_v39 = vadd.f32 %v2990_v35, %v2927_v44  ;;  %v3655_v59 = vpop.f32.mrb[49].mxu1 }
0x1267   : > { %v2993_v60 = vpop.f32.mrb[50].mxu1 }
0x1268   : > { %v2994_v48 = vadd.f32 %v2993_v60, %v2927_v44  ;;  %v3656_v61 = vpop.f32.mrb[51].mxu1  ;;  %v2997_v62 = vadd.f32 %v2991_v39, %v2827_v17  ;;  %v3033_v17 = vsub.s32 5, %v4052_v38 }
0x126a   : > { %v2999_v63 = vsel %vm500_vm2, %v2997_v62, 0.0  ;;  %v2998_v0 = vadd.f32 %v2994_v48, %v2828_v19  ;;  %v3028_v19 = vrot.slane %v4273_v37, %v3027_v16  ;;  %v3034_v22 = vrot.slane %v4273_v37, %v3033_v17 }
0x126b   : > { %3000 = vadd.xlane.f32.xlu0 %v2999_v63 }
0x126c   : > { %v3002_v1 = vsel %vm500_vm2, %v2998_v0, 0.0 }
0x126d   : > { %3003 = vadd.xlane.f32.xlu1 %v3002_v1 }
0x12f8   : > { %v3001_v2 = vpop.xlane.xlu0 %3000 }
0x12f9   : > { %v3005_v4 = vmul.f32 0.03125, %v3001_v2 }
0x12fa   : > { %v3004_v5 = vpop.xlane.xlu1 %3003 }
0x12fb   : > { %v3007_v6 = vsub.f32 %v2997_v62, %v3005_v4  ;;  %v3006_v7 = vmul.f32 0.03125, %v3004_v5 }
0x12fd   : > { %v3008_v9 = vsub.f32 %v2998_v0, %v3006_v7  ;;  %v3009_v8 = vmul.f32 %v3007_v6, %v3007_v6 }
0x12ff   : > { %v3011_v10 = vsel %vm500_vm2, %v3009_v8, 0.0  ;;  %v3010_v11 = vmul.f32 %v3008_v9, %v3008_v9 }
0x1300   : > { %3012 = vadd.xlane.f32.xlu0 %v3011_v10 }
0x1301   : > { %v3014_v12 = vsel %vm500_vm2, %v3010_v11, 0.0 }
0x1302   : > { %3015 = vadd.xlane.f32.xlu1 %v3014_v12 }
0x138d   : > { %v3013_v13 = vpop.xlane.xlu0 %3012 }
0x138e   : > { %v3017_v51 = vmul.f32 0.03125, %v3013_v13 }
0x138f   : > { %v3016_v15 = vpop.xlane.xlu1 %3015 }
0x1390   : > { %v3019_v18 = vadd.f32 1e-12, %v3017_v51  ;;  %v3018_v14 = vmul.f32 0.03125, %v3016_v15 }
0x1392   : > { %3773 = vrsqrt.f32 %v3019_v18  ;;  %v3020_v46 = vadd.f32 1e-12, %v3018_v14 }
0x1394   : > { %3775 = vrsqrt.f32 %v3020_v46 }
0x139c   : > { %v3774_v20 = vpop.eup %3773 }
0x139d   : > { %v3023_v21 = vmul.f32 %v3774_v20, %v3007_v6 }
0x139e   : > { %v3776_v23 = vpop.eup %3775 }
0x139f   : > { %v3029_v24 = vmul.f32 %v3028_v19, %v3023_v21  ;;  %v3024_v25 = vmul.f32 %v3776_v23, %v3008_v9 }
0x13a1   : > { %v3030_v26 = vmul.f32 %v3028_v19, %v3024_v25  ;;  %v3035_v27 = vadd.f32 %v3034_v22, %v3029_v24 }
0x13a3   : > { %v3036_v38 = vadd.f32 %v3034_v22, %v3030_v26  ;;  %3037 = vst.msk [vmem:[#allocation2] sm:$0xff] %vm500_vm2, %v3035_v27  ;;  %3039 = vst.msk [vmem:[%s3993_s25] sm:$0xff] %vm500_vm2, %v3035_v27 }
0x13a5   : > { %3038 = vst.msk [vmem:[#allocation2 + $0x8] sm:$0xff] %vm500_vm2, %v3036_v38  ;;  %3040 = vst.msk [vmem:[%s3993_s25 + $0x8] sm:$0xff] %vm500_vm2, %v3036_v38 }
0x13a6   : > { %3792 = shalt.err (!%p3789_p4)
}
0x13a7   : > { %s3793_s21 = scalar_lea.hbm %s4318_s27, 256  ;;  %s3797_s20 = scalar_lea.hbm %s4402_s17, 1024 }
0x13a8   : > { %p3794_p7 = scmp.ne.s32.totalorder %s4318_s27, %s3793_s21  ;;  %p3798_p10 = scmp.lt.u32.totalorder %s4318_s27, %s4402_s17 }
0x13a9   : > { %p3799_p11 = scmp.lt.u32.totalorder %s3797_s20, %s3793_s21  ;;  %p3801_p13 = scmp.lt.u32.totalorder %s3793_s21, %s4318_s27 }
0x13aa   : > { %p3795_p8 = pnand %p3794_p7, %p3937_p5 }
0x13ab   : > { %p3800_p12 = por %p3799_p11, %p3798_p10 }
0x13ac   : > { %p3796_p9 = pneg %p3795_p8 }
0x13ad   : > { %p3802_p0 = por %p3801_p13, %p3800_p12 }
0x13af   : > { %p3803_p1 = pnand %p3802_p0, %p3796_p9 }
0x13b1   : > { %3806 = shalt.err (!%p3803_p1)
}
0x13b2   : > { %s3847_s2 = smov 128   ;;  %s3848_s4 = smov 8  }
0x13b3   : > { %3659 = dma.vmem_to_hbm [thread:$0]  (%p3937_p5), %s4320_s23, 256, %s4318_s27, %s4330_s28, %s3847_s2, %s3847_s2, %s3848_s4  }
0x13b4 PF: > { %s4404_s30 = sld [smem:[#allocation8_spill]]  ;;  %s4405_s11 = sld [smem:[#allocation6_spill]] }
0x13ba   : > { %p3665_p2 = scmp.ge.s32.totalorder %s4404_s30, 2  ;;  %s3070_s26 = sand.u32 1, %s4405_s11  }
0x13bb   : > { %s3071_s29 = scalar_lea.sflag [#allocation4], %s3070_s26 }
0x13bc   : > { %p3662_p3 = pnand %p3665_p2, %p3941_p6 }
0x13be   : > { %3824 = dma.done.wait (!%p3662_p3), %s3071_s29, 256  }
0x13bf   : > { %3826 = vsyncadd (!%p3662_p3), %s3071_s29, 4294967040  ;;  %s4407_s12 = sld [smem:[#allocation9_spill]]  ;;  %s4408_s13 = sld [smem:[#allocation7_spill]] }
0x13c0   : > { %s4409_s11 = sld [smem:[#allocation10_spill]]  ;;  %s4410_s30 = smov %s3833_s10 }
0x13c5   : > { %p19_p4 = scmp.ge.s32.totalorder %s4407_s12, 6   ;;  %s4411_s10 = smov %s4408_s13 }
0x13c7   :  { %21 = sbr.rel (!%p19_p4) target bundleno = 7 (0x7), region = 138 }
0x13ce   :  { %3076 = vsyncpa [#allocation4], 1 }
0x13cf   :  { %3078 = vsyncpa [#allocation4 + $0x1], 1 }

</bundles_post_ra>
